<compile_context>
chip_gen: v7x
topology: tpu7x:2x2x1
jax: 0.10.0
libtpu: 0.0.40
codegen_flags: <defaults>
</compile_context>

<pallas_src>
import functools
import math

import jax
import jax.numpy as jnp
from jax import lax
from jax.experimental import pallas as pl
from jax.experimental.pallas import tpu as pltpu

EPS = 1e-6
NEG_INF = -1e9
# Scoped-VMEM limit: safe on v7x (64 MiB physical); raise toward 96 MiB on
# v5e/v6e (128 MiB physical) when weight slabs allow.
VMEM_LIMIT = 48 * 1024 * 1024


def _row_tile(m):
    # Full slab when small, else 512-row tiles (~85% of HBM roofline measured
    # for mem-bound tiled ops, amortizes per-step pipeline overhead).
    return m if m <= 512 else 512


def _ff_tile(f):
    # Hidden-dim slab width for the FFN reduction axis.
    return f if f <= 1024 else 512


def _mosaic(sem):
    return pltpu.CompilerParams(dimension_semantics=sem,
                                vmem_limit_bytes=VMEM_LIMIT)


# ----------------------------- Pallas kernels ------------------------------


def _layernorm(x, g, b):
    """torch-style LayerNorm: unbiased std, eps added to std. f32 math.

    One EUP reciprocal per row instead of a broadcast VALU divide.
    """
    d = x.shape[-1]
    mean = jnp.mean(x, axis=-1, keepdims=True)
    xc = x - mean
    var = jnp.sum(xc * xc, axis=-1, keepdims=True) * (1.0 / (d - 1))
    inv = pl.reciprocal(jnp.sqrt(var) + EPS, approx=True)
    return (xc * inv) * g + b


def ln_qkv_kernel(x_ref, g_ref, b_ref, w_ref, bias_ref, q_ref, k_ref, v_ref):
    """q,k,v = LN(x) @ [Wq|Wk|Wv] + [bq|bk|bv]  (one fused MXU pass, bf16 out)."""
    d = x_ref.shape[-1]
    nx = _layernorm(x_ref[...], g_ref[...], b_ref[...])            # f32
    qkv = jnp.dot(nx.astype(jnp.bfloat16), w_ref[...],
                  preferred_element_type=jnp.float32) + bias_ref[...]
    q_ref[...] = qkv[:, :d].astype(q_ref.dtype)
    k_ref[...] = qkv[:, d:2 * d].astype(k_ref.dtype)
    v_ref[...] = qkv[:, 2 * d:].astype(v_ref.dtype)
    # TODO(synk): for very large D on v7x, add an output-column grid axis so
    # the [D,3D] weight is streamed in slabs rather than fully VMEM-resident.


def ln_linear_kernel(x_ref, g_ref, b_ref, w_ref, bias_ref, o_ref):
    """LN(x) @ W + b  (bf16 out)."""
    nx = _layernorm(x_ref[...], g_ref[...], b_ref[...])
    y = jnp.dot(nx.astype(jnp.bfloat16), w_ref[...],
                preferred_element_type=jnp.float32) + bias_ref[...]
    o_ref[...] = y.astype(o_ref.dtype)


def kv_proj_kernel(m_ref, w_ref, bias_ref, k_ref, v_ref):
    """k,v = memory @ [Wk|Wv] + [bk|bv]  (bf16 out)."""
    d = k_ref.shape[-1]
    kv = jnp.dot(m_ref[...].astype(jnp.bfloat16), w_ref[...],
                 preferred_element_type=jnp.float32) + bias_ref[...]
    k_ref[...] = kv[:, :d].astype(k_ref.dtype)
    v_ref[...] = kv[:, d:].astype(v_ref.dtype)


def mha_kernel(len_ref, q_ref, k_ref, v_ref, wo_ref, bo_ref, res_ref, o_ref,
               *, num_heads, scale, causal):
    """Attention + fused output projection + residual for one (batch, q-tile).

    All heads are computed in-kernel from static column slices of the [*, D]
    projections; each head's context is immediately pushed through its Wo row
    slab and accumulated in f32, so the full [T,D] attention output never
    leaves VMEM and no concat / separate out-proj kernel is needed.
    The mask is generated in-kernel (causal iota compare + per-batch kv length
    from SMEM scalar prefetch) and hoisted out of the head loop.
    """
    b = pl.program_id(0)
    tq, d = q_ref.shape[1], q_ref.shape[2]
    s_len = k_ref.shape[1]
    dk = d // num_heads

    kv_len = len_ref[b]                                    # SMEM scalar
    s_idx = lax.broadcasted_iota(jnp.int32, (tq, s_len), 1)
    valid = s_idx < kv_len
    if causal:
        q_start = pl.program_id(1) * tq
        t_idx = q_start + lax.broadcasted_iota(jnp.int32, (tq, s_len), 0)
        valid = jnp.logical_and(valid, s_idx <= t_idx)

    q = q_ref[0]                                           # [tq, D] bf16
    k = k_ref[0]                                           # [S,  D] bf16
    v = v_ref[0]                                           # [S,  D] bf16

    acc = res_ref[0] + bo_ref[...]                         # residual + bo, f32
    for hidx in range(num_heads):
        lo, hi = hidx * dk, (hidx + 1) * dk
        qh, kh, vh = q[:, lo:hi], k[:, lo:hi], v[:, lo:hi]
        # QK^T via dot_general contracting last dims (no explicit transpose).
        s = lax.dot_general(qh, kh, (((1,), (1,)), ((), ())),
                            preferred_element_type=jnp.float32)
        s = jnp.where(valid, s * scale, NEG_INF)
        mx = jnp.max(s, axis=-1, keepdims=True)
        p = jnp.exp(s - mx)                                # f32 softmax numerics
        denom = jnp.sum(p, axis=-1, keepdims=True)
        p = p * pl.reciprocal(denom, approx=True)          # EUP reciprocal
        # TODO(synk): attention-weight dropout omitted (eval mode -> identity).
        ctx = jnp.dot(p.astype(jnp.bfloat16), vh,
                      preferred_element_type=jnp.float32)  # [tq, dk]
        acc = acc + jnp.dot(ctx.astype(jnp.bfloat16), wo_ref[lo:hi, :],
                            preferred_element_type=jnp.float32)
    # TODO(synk): for long S, add a kv grid axis + online softmax (flash) so
    # full [tq, S] scores never materialize in VMEM.
    o_ref[0] = acc.astype(o_ref.dtype)


def ln_ffn_residual_kernel(x_ref, g_ref, b_ref, w1_ref, b1_ref, w2_ref, b2_ref,
                           o_ref, nx_ref, acc_ref):
    """x + relu(LN(x) @ W1 + b1) @ W2 + b2, with the hidden dim F as a
    reduction grid axis: W1/W2 are streamed in (D,tf)/(tf,D) slabs, LN(x) is
    computed once into a bf16 scratch, accumulation is f32 in VMEM."""
    f = pl.program_id(1)

    @pl.when(f == 0)
    def _():
        x = x_ref[...]
        nx_ref[...] = _layernorm(x, g_ref[...], b_ref[...]).astype(jnp.bfloat16)
        acc_ref[...] = x + b2_ref[...]

    h = jnp.dot(nx_ref[...], w1_ref[...],
                preferred_element_type=jnp.float32) + b1_ref[...]
    h = jnp.maximum(h, 0.0)
    # TODO(synk): dropout between relu and W2 omitted (eval mode -> identity).
    acc_ref[...] += jnp.dot(h.astype(jnp.bfloat16), w2_ref[...],
                            preferred_element_type=jnp.float32)

    @pl.when(f == pl.num_programs(1) - 1)
    def _():
        o_ref[...] = acc_ref[...]


# ----------------------------- Pallas wrappers ------------------------------


def ln_qkv(x2d, g, b, w_qkv, b_qkv):
    M, D = x2d.shape
    tm = _row_tile(M)
    return pl.pallas_call(
        ln_qkv_kernel,
        out_shape=[jax.ShapeDtypeStruct((M, D), jnp.bfloat16)] * 3,
        grid=(pl.cdiv(M, tm),),
        in_specs=[
            pl.BlockSpec((tm, D), lambda i: (i, 0)),
            pl.BlockSpec((1, D), lambda i: (0, 0)),
            pl.BlockSpec((1, D), lambda i: (0, 0)),
            pl.BlockSpec((D, 3 * D), lambda i: (0, 0)),
            pl.BlockSpec((1, 3 * D), lambda i: (0, 0)),
        ],
        out_specs=[pl.BlockSpec((tm, D), lambda i: (i, 0))] * 3,
        compiler_params=_mosaic(("parallel",)),
    )(x2d, g, b, w_qkv, b_qkv)


def ln_linear(x2d, g, b, w, bias):
    M, D = x2d.shape
    N = w.shape[1]
    tm = _row_tile(M)
    return pl.pallas_call(
        ln_linear_kernel,
        out_shape=jax.ShapeDtypeStruct((M, N), jnp.bfloat16),
        grid=(pl.cdiv(M, tm),),
        in_specs=[
            pl.BlockSpec((tm, D), lambda i: (i, 0)),
            pl.BlockSpec((1, D), lambda i: (0, 0)),
            pl.BlockSpec((1, D), lambda i: (0, 0)),
            pl.BlockSpec((D, N), lambda i: (0, 0)),
            pl.BlockSpec((1, N), lambda i: (0, 0)),
        ],
        out_specs=pl.BlockSpec((tm, N), lambda i: (i, 0)),
        compiler_params=_mosaic(("parallel",)),
    )(x2d, g, b, w, bias)


def kv_proj(m2d, w_kv, b_kv):
    M, D = m2d.shape
    tm = _row_tile(M)
    return pl.pallas_call(
        kv_proj_kernel,
        out_shape=[jax.ShapeDtypeStruct((M, D), jnp.bfloat16)] * 2,
        grid=(pl.cdiv(M, tm),),
        in_specs=[
            pl.BlockSpec((tm, D), lambda i: (i, 0)),
            pl.BlockSpec((D, 2 * D), lambda i: (0, 0)),
            pl.BlockSpec((1, 2 * D), lambda i: (0, 0)),
        ],
        out_specs=[pl.BlockSpec((tm, D), lambda i: (i, 0))] * 2,
        compiler_params=_mosaic(("parallel",)),
    )(m2d, w_kv, b_kv)


def mha_core(q, k, v, kv_lengths, wo, bo, res, *, num_heads, causal):
    """q:[B,T,D] bf16  k,v:[B,S,D] bf16  res:[B,T,D] f32  kv_lengths:[B] i32.

    Returns res + MHA(q,k,v) @ Wo + bo   (f32 residual stream).
    """
    B, T, D = q.shape
    S = k.shape[1]
    tq = T if T <= 256 else 256
    scale = 1.0 / math.sqrt(D // num_heads)
    kern = functools.partial(mha_kernel, num_heads=num_heads, scale=scale,
                             causal=causal)
    return pl.pallas_call(
        kern,
        out_shape=jax.ShapeDtypeStruct((B, T, D), jnp.float32),
        grid_spec=pltpu.PrefetchScalarGridSpec(
            num_scalar_prefetch=1,
            grid=(B, pl.cdiv(T, tq)),
            in_specs=[
                pl.BlockSpec((1, tq, D), lambda b, qi, lens: (b, qi, 0)),
                pl.BlockSpec((1, S, D), lambda b, qi, lens: (b, 0, 0)),
                pl.BlockSpec((1, S, D), lambda b, qi, lens: (b, 0, 0)),
                pl.BlockSpec((D, D), lambda b, qi, lens: (0, 0)),
                pl.BlockSpec((1, D), lambda b, qi, lens: (0, 0)),
                pl.BlockSpec((1, tq, D), lambda b, qi, lens: (b, qi, 0)),
            ],
            out_specs=pl.BlockSpec((1, tq, D), lambda b, qi, lens: (b, qi, 0)),
        ),
        compiler_params=_mosaic(("parallel", "parallel")),
    )(kv_lengths, q, k, v, wo, bo, res)


def ln_ffn_residual(x2d, g, b, w1, b1, w2, b2):
    M, D = x2d.shape
    F = w1.shape[1]
    tm = _row_tile(M)
    tf = _ff_tile(F)
    return pl.pallas_call(
        ln_ffn_residual_kernel,
        out_shape=jax.ShapeDtypeStruct((M, D), jnp.float32),
        grid=(pl.cdiv(M, tm), pl.cdiv(F, tf)),
        in_specs=[
            pl.BlockSpec((tm, D), lambda i, f: (i, 0)),
            pl.BlockSpec((1, D), lambda i, f: (0, 0)),
            pl.BlockSpec((1, D), lambda i, f: (0, 0)),
            pl.BlockSpec((D, tf), lambda i, f: (0, f)),
            pl.BlockSpec((1, tf), lambda i, f: (0, f)),
            pl.BlockSpec((tf, D), lambda i, f: (f, 0)),
            pl.BlockSpec((1, D), lambda i, f: (0, 0)),
        ],
        out_specs=pl.BlockSpec((tm, D), lambda i, f: (i, 0)),
        scratch_shapes=[
            pltpu.VMEM((tm, D), jnp.bfloat16),   # LN(x) reused across F slabs
            pltpu.VMEM((tm, D), jnp.float32),    # f32 accumulator
        ],
        compiler_params=_mosaic(("parallel", "arbitrary")),
    )(x2d, g, b, w1, b1, w2, b2)


# --------------------- parameter prep (done ONCE, not per step) --------------


def prepare_params(p):
    """Fuse + cast weights once: Wqkv [D,3D] bf16, Wkv [D,2D] bf16, all other
    weights bf16, biases / LN params as (1,N) f32 rows. Avoids per-call XLA
    concat/cast HBM traffic inside the jitted forward."""
    def row(v):
        return jnp.asarray(v, jnp.float32).reshape(1, -1)

    sa, ca, ff = p["self_attn"], p["src_attn"], p["ff"]
    return {
        "self": {
            "w_qkv": jnp.concatenate([sa["wq"], sa["wk"], sa["wv"]],
                                     axis=1).astype(jnp.bfloat16),
            "b_qkv": row(jnp.concatenate([sa["bq"], sa["bk"], sa["bv"]])),
            "wo": sa["wo"].astype(jnp.bfloat16), "bo": row(sa["bo"]),
        },
        "src": {
            "wq": ca["wq"].astype(jnp.bfloat16), "bq": row(ca["bq"]),
            "w_kv": jnp.concatenate([ca["wk"], ca["wv"]],
                                    axis=1).astype(jnp.bfloat16),
            "b_kv": row(jnp.concatenate([ca["bk"], ca["bv"]])),
            "wo": ca["wo"].astype(jnp.bfloat16), "bo": row(ca["bo"]),
        },
        "ff": {
            "w1": ff["w1"].astype(jnp.bfloat16), "b1": row(ff["b1"]),
            "w2": ff["w2"].astype(jnp.bfloat16), "b2": row(ff["b2"]),
        },
        "ln0_g": row(p["ln0_g"]), "ln0_b": row(p["ln0_b"]),
        "ln1_g": row(p["ln1_g"]), "ln1_b": row(p["ln1_b"]),
        "ln2_g": row(p["ln2_g"]), "ln2_b": row(p["ln2_b"]),
    }


# ----------------------------- decoder layer --------------------------------


def decoder_layer(prep, x, memory, src_lengths, tgt_lengths, *, num_heads):
    """Pre-norm residual decoder layer (dropout == identity / eval mode).

    Masks: self-attn uses a causal mask limited to tgt_lengths[b] kv tokens;
    cross-attn uses a padding mask of src_lengths[b] kv tokens — both are
    generated in-kernel from SMEM-prefetched lengths.
    # TODO(synk): arbitrary precomputed mask tensors (as in the PyTorch API)
    # would need a mask-input variant of mha_kernel.
    """
    B, T, D = x.shape
    S = memory.shape[1]

    # --- self-attention sublayer:  x = x + SelfAttn(LN0(x)) @ Wo + bo ---
    sp = prep["self"]
    x2d = x.reshape(B * T, D)
    q2d, k2d, v2d = ln_qkv(x2d, prep["ln0_g"], prep["ln0_b"],
                           sp["w_qkv"], sp["b_qkv"])
    x = mha_core(q2d.reshape(B, T, D), k2d.reshape(B, T, D),
                 v2d.reshape(B, T, D), tgt_lengths, sp["wo"], sp["bo"], x,
                 num_heads=num_heads, causal=True)

    # --- cross-attention sublayer:  x = x + SrcAttn(LN1(x), memory) @ Wo + bo ---
    cp = prep["src"]
    x2d = x.reshape(B * T, D)
    q2d = ln_linear(x2d, prep["ln1_g"], prep["ln1_b"], cp["wq"], cp["bq"])
    k2d, v2d = kv_proj(memory.reshape(B * S, D), cp["w_kv"], cp["b_kv"])
    x = mha_core(q2d.reshape(B, T, D), k2d.reshape(B, S, D),
                 v2d.reshape(B, S, D), src_lengths, cp["wo"], cp["bo"], x,
                 num_heads=num_heads, causal=False)

    # --- FFN sublayer:  x = x + relu(LN2(x) @ W1 + b1) @ W2 + b2 ---
    f = prep["ff"]
    x2d = ln_ffn_residual(x.reshape(B * T, D), prep["ln2_g"], prep["ln2_b"],
                          f["w1"], f["b1"], f["w2"], f["b2"])
    return x2d.reshape(B, T, D)


# --------------------------- pure-JAX reference -----------------------------


def ref_layernorm(x, g, b):
    mean = x.mean(-1, keepdims=True)
    xc = x - mean
    std = jnp.sqrt((xc * xc).sum(-1, keepdims=True) / (x.shape[-1] - 1))
    return g * xc / (std + EPS) + b


def ref_mha(p, q, k, v, mask, h):
    B, T, D = q.shape
    S = k.shape[1]
    dk = D // h
    qp = (q @ p["wq"] + p["bq"]).reshape(B, T, h, dk).transpose(0, 2, 1, 3)
    kp = (k @ p["wk"] + p["bk"]).reshape(B, S, h, dk).transpose(0, 2, 1, 3)
    vp = (v @ p["wv"] + p["bv"]).reshape(B, S, h, dk).transpose(0, 2, 1, 3)
    sc = jnp.einsum("bhtd,bhsd->bhts", qp, kp) / math.sqrt(dk)
    sc = jnp.where(mask == 0, NEG_INF, sc)
    pr = jax.nn.softmax(sc, axis=-1)
    o = jnp.einsum("bhts,bhsd->bhtd", pr, vp).transpose(0, 2, 1, 3).reshape(B, T, D)
    return o @ p["wo"] + p["bo"]


def ref_decoder_layer(params, x, memory, src_mask, tgt_mask, h):
    nx = ref_layernorm(x, params["ln0_g"], params["ln0_b"])
    x = x + ref_mha(params["self_attn"], nx, nx, nx, tgt_mask[:, None, :, :], h)
    nx = ref_layernorm(x, params["ln1_g"], params["ln1_b"])
    x = x + ref_mha(params["src_attn"], nx, memory, memory,
                    src_mask[:, None, :, :], h)
    nx = ref_layernorm(x, params["ln2_g"], params["ln2_b"])
    f = params["ff"]
    x = x + (jnp.maximum(nx @ f["w1"] + f["b1"], 0.0) @ f["w2"] + f["b2"])
    return x


# --------------------------------- main --------------------------------------


def make_params(key, d_model, d_ff):
    keys = jax.random.split(key, 20)

    def lin(k, fan_in, fan_out):
        return 0.05 * jax.random.normal(k, (fan_in, fan_out), jnp.float32)

    def vec(k, n):
        return 0.1 * jax.random.normal(k, (n,), jnp.float32)

    def attn_params(ks):
        return {
            "wq": lin(ks[0], d_model, d_model), "bq": vec(ks[4], d_model),
            "wk": lin(ks[1], d_model, d_model), "bk": vec(ks[5], d_model),
            "wv": lin(ks[2], d_model, d_model), "bv": vec(ks[6], d_model),
            "wo": lin(ks[3], d_model, d_model), "bo": vec(ks[7], d_model),
        }

    return {
        "self_attn": attn_params(keys[0:8]),
        "src_attn": attn_params(keys[8:16]),
        "ff": {
            "w1": lin(keys[16], d_model, d_ff), "b1": vec(keys[17], d_ff),
            "w2": lin(keys[18], d_ff, d_model), "b2": vec(keys[19], d_model),
        },
        "ln0_g": jnp.ones((d_model,), jnp.float32), "ln0_b": jnp.zeros((d_model,), jnp.float32),
        "ln1_g": jnp.ones((d_model,), jnp.float32), "ln1_b": jnp.zeros((d_model,), jnp.float32),
        "ln2_g": jnp.ones((d_model,), jnp.float32), "ln2_b": jnp.zeros((d_model,), jnp.float32),
    }


if __name__ == "__main__":
    # NOTE: production D / 3D / F should be multiples of 128 for lane-dense
    # stores; these small test shapes exercise correctness only.
    B, T, S, D, H, DFF = 2, 8, 16, 32, 4, 64

    key = jax.random.PRNGKey(0)
    kx, km, kp = jax.random.split(key, 3)
    x = jax.random.normal(kx, (B, T, D), jnp.float32)
    memory = jax.random.normal(km, (B, S, D), jnp.float32)
    params = make_params(kp, D, DFF)
    prep = prepare_params(params)           # one-time weight fuse + bf16 cast

    # self-attn: causal over full tgt; cross-attn: padding (batch 1 sees 12 toks)
    tgt_lengths = jnp.array([T, T], jnp.int32)
    src_lengths = jnp.array([S, 12], jnp.int32)

    # equivalent mask tensors for the pure-JAX reference
    causal = jnp.tril(jnp.ones((T, T), jnp.int32))
    tgt_pad = (jnp.arange(T)[None, :] < tgt_lengths[:, None]).astype(jnp.int32)
    tgt_mask = causal[None] * tgt_pad[:, None, :]                       # [B,T,T]
    src_mask = (jnp.arange(S)[None, :] < src_lengths[:, None]
                ).astype(jnp.int32)[:, None, :]                          # [B,1,S]

    fwd = jax.jit(decoder_layer, static_argnames=("num_heads",))
    out = jax.block_until_ready(
        fwd(prep, x, memory, src_lengths, tgt_lengths, num_heads=H))

    ref = ref_decoder_layer(params, x, memory, src_mask, tgt_mask, H)
    assert out.shape == (B, T, D)
    assert bool(jnp.all(jnp.isfinite(out)))
    assert bool(jnp.allclose(out, ref, rtol=2e-2, atol=2e-2))

    print("KERNEL_OK")
</pallas_src>

<mosaic_0001>
module attributes {stable_mosaic.version = 11 : i64} {
  func.func @ln_qkv_kernel(%arg0: i32, %arg1: memref<16x32xf32, #tpu.memory_space<vmem>>, %arg2: memref<1x32xf32, #tpu.memory_space<vmem>>, %arg3: memref<1x32xf32, #tpu.memory_space<vmem>>, %arg4: memref<32x96xbf16, #tpu.memory_space<vmem>>, %arg5: memref<1x96xf32, #tpu.memory_space<vmem>>, %arg6: memref<16x32xbf16, #tpu.memory_space<vmem>>, %arg7: memref<16x32xbf16, #tpu.memory_space<vmem>>, %arg8: memref<16x32xbf16, #tpu.memory_space<vmem>>) attributes {dimension_semantics = [#tpu.dimension_semantics<parallel>], iteration_bounds = array<i64: 1>, scalar_prefetch = 0 : i64, scratch_operands = 0 : i64, tpu.core_type = #tpu.core_type<tc>, window_params = [{transform_indices = @transform_0, window_bounds = array<i64: 16, 32>}, {pipeline_mode = #tpu.pipeline_mode<synchronous>, transform_indices = @transform_1, window_bounds = array<i64: 1, 32>}, {pipeline_mode = #tpu.pipeline_mode<synchronous>, transform_indices = @transform_2, window_bounds = array<i64: 1, 32>}, {pipeline_mode = #tpu.pipeline_mode<synchronous>, transform_indices = @transform_3, window_bounds = array<i64: 32, 96>}, {pipeline_mode = #tpu.pipeline_mode<synchronous>, transform_indices = @transform_4, window_bounds = array<i64: 1, 96>}, {transform_indices = @transform_5, window_bounds = array<i64: 16, 32>}, {transform_indices = @transform_6, window_bounds = array<i64: 16, 32>}, {transform_indices = @transform_7, window_bounds = array<i64: 16, 32>}]} {
    %c0 = arith.constant 0 : index
    %c0_0 = arith.constant 0 : index
    %0 = vector.load %arg1[%c0, %c0_0] : memref<16x32xf32, #tpu.memory_space<vmem>>, vector<16x32xf32>
    %c0_1 = arith.constant 0 : index
    %c0_2 = arith.constant 0 : index
    %1 = vector.load %arg2[%c0_1, %c0_2] : memref<1x32xf32, #tpu.memory_space<vmem>>, vector<1x32xf32>
    %c0_3 = arith.constant 0 : index
    %c0_4 = arith.constant 0 : index
    %2 = vector.load %arg3[%c0_3, %c0_4] : memref<1x32xf32, #tpu.memory_space<vmem>>, vector<1x32xf32>
    %cst = arith.constant dense<0.000000e+00> : vector<16xf32>
    %3 = vector.multi_reduction <add>, %0, %cst [1] : vector<16x32xf32> to vector<16xf32>
    %4 = vector.shape_cast %3 : vector<16xf32> to vector<16x1xf32>
    %cst_5 = arith.constant 3.200000e+01 : f32
    %5 = vector.broadcast %cst_5 : f32 to vector<16x1xf32>
    %6 = arith.divf %4, %5 : vector<16x1xf32>
    %7 = vector.broadcast %6 : vector<16x1xf32> to vector<16x32xf32>
    %8 = arith.subf %0, %7 : vector<16x32xf32>
    %9 = arith.mulf %8, %8 : vector<16x32xf32>
    %cst_6 = arith.constant dense<0.000000e+00> : vector<16xf32>
    %10 = vector.multi_reduction <add>, %9, %cst_6 [1] : vector<16x32xf32> to vector<16xf32>
    %11 = vector.shape_cast %10 : vector<16xf32> to vector<16x1xf32>
    %cst_7 = arith.constant 0.0322580636 : f32
    %12 = vector.broadcast %cst_7 : f32 to vector<16x1xf32>
    %13 = arith.mulf %11, %12 : vector<16x1xf32>
    %14 = math.sqrt %13 : vector<16x1xf32>
    %cst_8 = arith.constant 9.99999997E-7 : f32
    %15 = vector.broadcast %cst_8 : f32 to vector<16x1xf32>
    %16 = arith.addf %14, %15 : vector<16x1xf32>
    %17 = tpu.reciprocal %16 {approx = true} : vector<16x1xf32> -> vector<16x1xf32>
    %18 = vector.broadcast %17 : vector<16x1xf32> to vector<16x32xf32>
    %19 = arith.mulf %8, %18 : vector<16x32xf32>
    %20 = vector.broadcast %1 : vector<1x32xf32> to vector<16x32xf32>
    %21 = arith.mulf %19, %20 : vector<16x32xf32>
    %22 = vector.broadcast %2 : vector<1x32xf32> to vector<16x32xf32>
    %23 = arith.addf %21, %22 : vector<16x32xf32>
    %24 = arith.truncf %23 : vector<16x32xf32> to vector<16x32xbf16>
    %c0_9 = arith.constant 0 : index
    %c0_10 = arith.constant 0 : index
    %25 = vector.load %arg4[%c0_9, %c0_10] : memref<32x96xbf16, #tpu.memory_space<vmem>>, vector<32x96xbf16>
    %cst_11 = arith.constant dense<0.000000e+00> : vector<16x96xf32>
    %26 = tpu.matmul %24, %25, %cst_11 {dimension_numbers = #tpu.dot_dimension_numbers<[1], [0], [0], [1], [0, 0, 1, 1], [], []>} : vector<16x32xbf16>, vector<32x96xbf16>, vector<16x96xf32> -> vector<16x96xf32>
    %c0_12 = arith.constant 0 : index
    %c0_13 = arith.constant 0 : index
    %27 = vector.load %arg5[%c0_12, %c0_13] : memref<1x96xf32, #tpu.memory_space<vmem>>, vector<1x96xf32>
    %28 = vector.broadcast %27 : vector<1x96xf32> to vector<16x96xf32>
    %29 = arith.addf %26, %28 : vector<16x96xf32>
    %30 = vector.extract_strided_slice %29 {offsets = [0, 0], sizes = [16, 32], strides = [1, 1]} : vector<16x96xf32> to vector<16x32xf32>
    %31 = arith.truncf %30 : vector<16x32xf32> to vector<16x32xbf16>
    %c0_14 = arith.constant 0 : index
    %c0_15 = arith.constant 0 : index
    %32 = vector.load %arg6[%c0_14, %c0_15] : memref<16x32xbf16, #tpu.memory_space<vmem>>, vector<16x32xbf16>
    tpu.vector_store %arg6[%c0_14, %c0_15], %31 {strides = array<i32>} : memref<16x32xbf16, #tpu.memory_space<vmem>>, vector<16x32xbf16>,
    %33 = vector.extract_strided_slice %29 {offsets = [0, 32], sizes = [16, 32], strides = [1, 1]} : vector<16x96xf32> to vector<16x32xf32>
    %34 = arith.truncf %33 : vector<16x32xf32> to vector<16x32xbf16>
    %c0_16 = arith.constant 0 : index
    %c0_17 = arith.constant 0 : index
    %35 = vector.load %arg7[%c0_16, %c0_17] : memref<16x32xbf16, #tpu.memory_space<vmem>>, vector<16x32xbf16>
    tpu.vector_store %arg7[%c0_16, %c0_17], %34 {strides = array<i32>} : memref<16x32xbf16, #tpu.memory_space<vmem>>, vector<16x32xbf16>,
    %36 = vector.extract_strided_slice %29 {offsets = [0, 64], sizes = [16, 32], strides = [1, 1]} : vector<16x96xf32> to vector<16x32xf32>
    %37 = arith.truncf %36 : vector<16x32xf32> to vector<16x32xbf16>
    %c0_18 = arith.constant 0 : index
    %c0_19 = arith.constant 0 : index
    %38 = vector.load %arg8[%c0_18, %c0_19] : memref<16x32xbf16, #tpu.memory_space<vmem>>, vector<16x32xbf16>
    tpu.vector_store %arg8[%c0_18, %c0_19], %37 {strides = array<i32>} : memref<16x32xbf16, #tpu.memory_space<vmem>>, vector<16x32xbf16>,
    return
  }
  func.func @transform_0(%arg0: i32) -> (i32, i32) {
    %c0_i32 = arith.constant 0 : i32
    %c0_i32_0 = arith.constant 0 : i32
    return %arg0, %c0_i32 : i32, i32
  }
  func.func @transform_1(%arg0: i32) -> (i32, i32) {
    %c0_i32 = arith.constant 0 : i32
    %c0_i32_0 = arith.constant 0 : i32
    %c0_i32_1 = arith.constant 0 : i32
    return %c0_i32, %c0_i32_0 : i32, i32
  }
  func.func @transform_2(%arg0: i32) -> (i32, i32) {
    %c0_i32 = arith.constant 0 : i32
    %c0_i32_0 = arith.constant 0 : i32
    %c0_i32_1 = arith.constant 0 : i32
    return %c0_i32, %c0_i32_0 : i32, i32
  }
  func.func @transform_3(%arg0: i32) -> (i32, i32) {
    %c0_i32 = arith.constant 0 : i32
    %c0_i32_0 = arith.constant 0 : i32
    %c0_i32_1 = arith.constant 0 : i32
    return %c0_i32, %c0_i32_0 : i32, i32
  }
  func.func @transform_4(%arg0: i32) -> (i32, i32) {
    %c0_i32 = arith.constant 0 : i32
    %c0_i32_0 = arith.constant 0 : i32
    %c0_i32_1 = arith.constant 0 : i32
    return %c0_i32, %c0_i32_0 : i32, i32
  }
  func.func @transform_5(%arg0: i32) -> (i32, i32) {
    %c0_i32 = arith.constant 0 : i32
    %c0_i32_0 = arith.constant 0 : i32
    return %arg0, %c0_i32 : i32, i32
  }
  func.func @transform_6(%arg0: i32) -> (i32, i32) {
    %c0_i32 = arith.constant 0 : i32
    %c0_i32_0 = arith.constant 0 : i32
    return %arg0, %c0_i32 : i32, i32
  }
  func.func @transform_7(%arg0: i32) -> (i32, i32) {
    %c0_i32 = arith.constant 0 : i32
    %c0_i32_0 = arith.constant 0 : i32
    return %arg0, %c0_i32 : i32, i32
  }
}

module attributes {stable_mosaic.version = 11 : i64} {
  func.func @ln_linear_kernel(%arg0: i32, %arg1: memref<16x32xf32, #tpu.memory_space<vmem>>, %arg2: memref<1x32xf32, #tpu.memory_space<vmem>>, %arg3: memref<1x32xf32, #tpu.memory_space<vmem>>, %arg4: memref<32x32xbf16, #tpu.memory_space<vmem>>, %arg5: memref<1x32xf32, #tpu.memory_space<vmem>>, %arg6: memref<16x32xbf16, #tpu.memory_space<vmem>>) attributes {dimension_semantics = [#tpu.dimension_semantics<parallel>], iteration_bounds = array<i64: 1>, scalar_prefetch = 0 : i64, scratch_operands = 0 : i64, tpu.core_type = #tpu.core_type<tc>, window_params = [{transform_indices = @transform_0, window_bounds = array<i64: 16, 32>}, {pipeline_mode = #tpu.pipeline_mode<synchronous>, transform_indices = @transform_1, window_bounds = array<i64: 1, 32>}, {pipeline_mode = #tpu.pipeline_mode<synchronous>, transform_indices = @transform_2, window_bounds = array<i64: 1, 32>}, {pipeline_mode = #tpu.pipeline_mode<synchronous>, transform_indices = @transform_3, window_bounds = array<i64: 32, 32>}, {pipeline_mode = #tpu.pipeline_mode<synchronous>, transform_indices = @transform_4, window_bounds = array<i64: 1, 32>}, {transform_indices = @transform_5, window_bounds = array<i64: 16, 32>}]} {
    %c0 = arith.constant 0 : index
    %c0_0 = arith.constant 0 : index
    %0 = vector.load %arg1[%c0, %c0_0] : memref<16x32xf32, #tpu.memory_space<vmem>>, vector<16x32xf32>
    %c0_1 = arith.constant 0 : index
    %c0_2 = arith.constant 0 : index
    %1 = vector.load %arg2[%c0_1, %c0_2] : memref<1x32xf32, #tpu.memory_space<vmem>>, vector<1x32xf32>
    %c0_3 = arith.constant 0 : index
    %c0_4 = arith.constant 0 : index
    %2 = vector.load %arg3[%c0_3, %c0_4] : memref<1x32xf32, #tpu.memory_space<vmem>>, vector<1x32xf32>
    %cst = arith.constant dense<0.000000e+00> : vector<16xf32>
    %3 = vector.multi_reduction <add>, %0, %cst [1] : vector<16x32xf32> to vector<16xf32>
    %4 = vector.shape_cast %3 : vector<16xf32> to vector<16x1xf32>
    %cst_5 = arith.constant 3.200000e+01 : f32
    %5 = vector.broadcast %cst_5 : f32 to vector<16x1xf32>
    %6 = arith.divf %4, %5 : vector<16x1xf32>
    %7 = vector.broadcast %6 : vector<16x1xf32> to vector<16x32xf32>
    %8 = arith.subf %0, %7 : vector<16x32xf32>
    %9 = arith.mulf %8, %8 : vector<16x32xf32>
    %cst_6 = arith.constant dense<0.000000e+00> : vector<16xf32>
    %10 = vector.multi_reduction <add>, %9, %cst_6 [1] : vector<16x32xf32> to vector<16xf32>
    %11 = vector.shape_cast %10 : vector<16xf32> to vector<16x1xf32>
    %cst_7 = arith.constant 0.0322580636 : f32
    %12 = vector.broadcast %cst_7 : f32 to vector<16x1xf32>
    %13 = arith.mulf %11, %12 : vector<16x1xf32>
    %14 = math.sqrt %13 : vector<16x1xf32>
    %cst_8 = arith.constant 9.99999997E-7 : f32
    %15 = vector.broadcast %cst_8 : f32 to vector<16x1xf32>
    %16 = arith.addf %14, %15 : vector<16x1xf32>
    %17 = tpu.reciprocal %16 {approx = true} : vector<16x1xf32> -> vector<16x1xf32>
    %18 = vector.broadcast %17 : vector<16x1xf32> to vector<16x32xf32>
    %19 = arith.mulf %8, %18 : vector<16x32xf32>
    %20 = vector.broadcast %1 : vector<1x32xf32> to vector<16x32xf32>
    %21 = arith.mulf %19, %20 : vector<16x32xf32>
    %22 = vector.broadcast %2 : vector<1x32xf32> to vector<16x32xf32>
    %23 = arith.addf %21, %22 : vector<16x32xf32>
    %24 = arith.truncf %23 : vector<16x32xf32> to vector<16x32xbf16>
    %c0_9 = arith.constant 0 : index
    %c0_10 = arith.constant 0 : index
    %25 = vector.load %arg4[%c0_9, %c0_10] : memref<32x32xbf16, #tpu.memory_space<vmem>>, vector<32x32xbf16>
    %cst_11 = arith.constant dense<0.000000e+00> : vector<16x32xf32>
    %26 = tpu.matmul %24, %25, %cst_11 {dimension_numbers = #tpu.dot_dimension_numbers<[1], [0], [0], [1], [0, 0, 1, 1], [], []>} : vector<16x32xbf16>, vector<32x32xbf16>, vector<16x32xf32> -> vector<16x32xf32>
    %c0_12 = arith.constant 0 : index
    %c0_13 = arith.constant 0 : index
    %27 = vector.load %arg5[%c0_12, %c0_13] : memref<1x32xf32, #tpu.memory_space<vmem>>, vector<1x32xf32>
    %28 = vector.broadcast %27 : vector<1x32xf32> to vector<16x32xf32>
    %29 = arith.addf %26, %28 : vector<16x32xf32>
    %30 = arith.truncf %29 : vector<16x32xf32> to vector<16x32xbf16>
    %c0_14 = arith.constant 0 : index
    %c0_15 = arith.constant 0 : index
    %31 = vector.load %arg6[%c0_14, %c0_15] : memref<16x32xbf16, #tpu.memory_space<vmem>>, vector<16x32xbf16>
    tpu.vector_store %arg6[%c0_14, %c0_15], %30 {strides = array<i32>} : memref<16x32xbf16, #tpu.memory_space<vmem>>, vector<16x32xbf16>,
    return
  }
  func.func @transform_0(%arg0: i32) -> (i32, i32) {
    %c0_i32 = arith.constant 0 : i32
    %c0_i32_0 = arith.constant 0 : i32
    return %arg0, %c0_i32 : i32, i32
  }
  func.func @transform_1(%arg0: i32) -> (i32, i32) {
    %c0_i32 = arith.constant 0 : i32
    %c0_i32_0 = arith.constant 0 : i32
    %c0_i32_1 = arith.constant 0 : i32
    return %c0_i32, %c0_i32_0 : i32, i32
  }
  func.func @transform_2(%arg0: i32) -> (i32, i32) {
    %c0_i32 = arith.constant 0 : i32
    %c0_i32_0 = arith.constant 0 : i32
    %c0_i32_1 = arith.constant 0 : i32
    return %c0_i32, %c0_i32_0 : i32, i32
  }
  func.func @transform_3(%arg0: i32) -> (i32, i32) {
    %c0_i32 = arith.constant 0 : i32
    %c0_i32_0 = arith.constant 0 : i32
    %c0_i32_1 = arith.constant 0 : i32
    return %c0_i32, %c0_i32_0 : i32, i32
  }
  func.func @transform_4(%arg0: i32) -> (i32, i32) {
    %c0_i32 = arith.constant 0 : i32
    %c0_i32_0 = arith.constant 0 : i32
    %c0_i32_1 = arith.constant 0 : i32
    return %c0_i32, %c0_i32_0 : i32, i32
  }
  func.func @transform_5(%arg0: i32) -> (i32, i32) {
    %c0_i32 = arith.constant 0 : i32
    %c0_i32_0 = arith.constant 0 : i32
    return %arg0, %c0_i32 : i32, i32
  }
}

module attributes {stable_mosaic.version = 11 : i64} {
  func.func @kv_proj_kernel(%arg0: i32, %arg1: memref<32x32xf32, #tpu.memory_space<vmem>>, %arg2: memref<32x64xbf16, #tpu.memory_space<vmem>>, %arg3: memref<1x64xf32, #tpu.memory_space<vmem>>, %arg4: memref<32x32xbf16, #tpu.memory_space<vmem>>, %arg5: memref<32x32xbf16, #tpu.memory_space<vmem>>) attributes {dimension_semantics = [#tpu.dimension_semantics<parallel>], iteration_bounds = array<i64: 1>, scalar_prefetch = 0 : i64, scratch_operands = 0 : i64, tpu.core_type = #tpu.core_type<tc>, window_params = [{transform_indices = @transform_0, window_bounds = array<i64: 32, 32>}, {pipeline_mode = #tpu.pipeline_mode<synchronous>, transform_indices = @transform_1, window_bounds = array<i64: 32, 64>}, {pipeline_mode = #tpu.pipeline_mode<synchronous>, transform_indices = @transform_2, window_bounds = array<i64: 1, 64>}, {transform_indices = @transform_3, window_bounds = array<i64: 32, 32>}, {transform_indices = @transform_4, window_bounds = array<i64: 32, 32>}]} {
    %c0 = arith.constant 0 : index
    %c0_0 = arith.constant 0 : index
    %0 = vector.load %arg1[%c0, %c0_0] : memref<32x32xf32, #tpu.memory_space<vmem>>, vector<32x32xf32>
    %1 = arith.truncf %0 : vector<32x32xf32> to vector<32x32xbf16>
    %c0_1 = arith.constant 0 : index
    %c0_2 = arith.constant 0 : index
    %2 = vector.load %arg2[%c0_1, %c0_2] : memref<32x64xbf16, #tpu.memory_space<vmem>>, vector<32x64xbf16>
    %cst = arith.constant dense<0.000000e+00> : vector<32x64xf32>
    %3 = tpu.matmul %1, %2, %cst {dimension_numbers = #tpu.dot_dimension_numbers<[1], [0], [0], [1], [0, 0, 1, 1], [], []>} : vector<32x32xbf16>, vector<32x64xbf16>, vector<32x64xf32> -> vector<32x64xf32>
    %c0_3 = arith.constant 0 : index
    %c0_4 = arith.constant 0 : index
    %4 = vector.load %arg3[%c0_3, %c0_4] : memref<1x64xf32, #tpu.memory_space<vmem>>, vector<1x64xf32>
    %5 = vector.broadcast %4 : vector<1x64xf32> to vector<32x64xf32>
    %6 = arith.addf %3, %5 : vector<32x64xf32>
    %7 = vector.extract_strided_slice %6 {offsets = [0, 0], sizes = [32, 32], strides = [1, 1]} : vector<32x64xf32> to vector<32x32xf32>
    %8 = arith.truncf %7 : vector<32x32xf32> to vector<32x32xbf16>
    %c0_5 = arith.constant 0 : index
    %c0_6 = arith.constant 0 : index
    %9 = vector.load %arg4[%c0_5, %c0_6] : memref<32x32xbf16, #tpu.memory_space<vmem>>, vector<32x32xbf16>
    tpu.vector_store %arg4[%c0_5, %c0_6], %8 {strides = array<i32>} : memref<32x32xbf16, #tpu.memory_space<vmem>>, vector<32x32xbf16>,
    %10 = vector.extract_strided_slice %6 {offsets = [0, 32], sizes = [32, 32], strides = [1, 1]} : vector<32x64xf32> to vector<32x32xf32>
    %11 = arith.truncf %10 : vector<32x32xf32> to vector<32x32xbf16>
    %c0_7 = arith.constant 0 : index
    %c0_8 = arith.constant 0 : index
    %12 = vector.load %arg5[%c0_7, %c0_8] : memref<32x32xbf16, #tpu.memory_space<vmem>>, vector<32x32xbf16>
    tpu.vector_store %arg5[%c0_7, %c0_8], %11 {strides = array<i32>} : memref<32x32xbf16, #tpu.memory_space<vmem>>, vector<32x32xbf16>,
    return
  }
  func.func @transform_0(%arg0: i32) -> (i32, i32) {
    %c0_i32 = arith.constant 0 : i32
    %c0_i32_0 = arith.constant 0 : i32
    return %arg0, %c0_i32 : i32, i32
  }
  func.func @transform_1(%arg0: i32) -> (i32, i32) {
    %c0_i32 = arith.constant 0 : i32
    %c0_i32_0 = arith.constant 0 : i32
    %c0_i32_1 = arith.constant 0 : i32
    return %c0_i32, %c0_i32_0 : i32, i32
  }
  func.func @transform_2(%arg0: i32) -> (i32, i32) {
    %c0_i32 = arith.constant 0 : i32
    %c0_i32_0 = arith.constant 0 : i32
    %c0_i32_1 = arith.constant 0 : i32
    return %c0_i32, %c0_i32_0 : i32, i32
  }
  func.func @transform_3(%arg0: i32) -> (i32, i32) {
    %c0_i32 = arith.constant 0 : i32
    %c0_i32_0 = arith.constant 0 : i32
    return %arg0, %c0_i32 : i32, i32
  }
  func.func @transform_4(%arg0: i32) -> (i32, i32) {
    %c0_i32 = arith.constant 0 : i32
    %c0_i32_0 = arith.constant 0 : i32
    return %arg0, %c0_i32 : i32, i32
  }
}

module attributes {stable_mosaic.version = 11 : i64} {
  func.func @mha_kernel(%arg0: i32, %arg1: i32, %arg2: memref<2xi32, #tpu.memory_space<smem>>, %arg3: memref<1x8x32xbf16, #tpu.memory_space<vmem>>, %arg4: memref<1x8x32xbf16, #tpu.memory_space<vmem>>, %arg5: memref<1x8x32xbf16, #tpu.memory_space<vmem>>, %arg6: memref<32x32xbf16, #tpu.memory_space<vmem>>, %arg7: memref<1x32xf32, #tpu.memory_space<vmem>>, %arg8: memref<1x8x32xf32, #tpu.memory_space<vmem>>, %arg9: memref<1x8x32xf32, #tpu.memory_space<vmem>>) attributes {dimension_semantics = [#tpu.dimension_semantics<parallel>, #tpu.dimension_semantics<parallel>], iteration_bounds = array<i64: 2, 1>, scalar_prefetch = 1 : i64, scratch_operands = 0 : i64, tpu.core_type = #tpu.core_type<tc>, window_params = [{transform_indices = @transform_0, window_bounds = array<i64: 1, 8, 32>}, {transform_indices = @transform_1, window_bounds = array<i64: 1, 8, 32>}, {transform_indices = @transform_2, window_bounds = array<i64: 1, 8, 32>}, {pipeline_mode = #tpu.pipeline_mode<synchronous>, transform_indices = @transform_3, window_bounds = array<i64: 32, 32>}, {pipeline_mode = #tpu.pipeline_mode<synchronous>, transform_indices = @transform_4, window_bounds = array<i64: 1, 32>}, {transform_indices = @transform_5, window_bounds = array<i64: 1, 8, 32>}, {transform_indices = @transform_6, window_bounds = array<i64: 1, 8, 32>}]} {
    %0 = arith.index_cast %arg0 : i32 to index
    %1 = memref.load %arg2[%0] : memref<2xi32, #tpu.memory_space<smem>>
    %2 = tpu.iota {dimensions = array<i32: 1>} : vector<8x8xi32>
    %3 = vector.broadcast %1 : i32 to vector<8x8xi32>
    %4 = arith.cmpi slt, %2, %3 : vector<8x8xi32>
    %c8_i32 = arith.constant 8 : i32
    %5 = arith.muli %arg1, %c8_i32 : i32
    %6 = tpu.iota {dimensions = array<i32: 0>} : vector<8x8xi32>
    %7 = vector.broadcast %5 : i32 to vector<8x8xi32>
    %8 = arith.addi %7, %6 : vector<8x8xi32>
    %9 = arith.cmpi sle, %2, %8 : vector<8x8xi32>
    %10 = arith.andi %4, %9 : vector<8x8xi1>
    %c0 = arith.constant 0 : index
    %c0_0 = arith.constant 0 : index
    %c0_1 = arith.constant 0 : index
    %11 = vector.load %arg3[%c0, %c0_0, %c0_1] : memref<1x8x32xbf16, #tpu.memory_space<vmem>>, vector<1x8x32xbf16>
    %12 = vector.shape_cast %11 : vector<1x8x32xbf16> to vector<8x32xbf16>
    %c0_2 = arith.constant 0 : index
    %c0_3 = arith.constant 0 : index
    %c0_4 = arith.constant 0 : index
    %13 = vector.load %arg4[%c0_2, %c0_3, %c0_4] : memref<1x8x32xbf16, #tpu.memory_space<vmem>>, vector<1x8x32xbf16>
    %14 = vector.shape_cast %13 : vector<1x8x32xbf16> to vector<8x32xbf16>
    %c0_5 = arith.constant 0 : index
    %c0_6 = arith.constant 0 : index
    %c0_7 = arith.constant 0 : index
    %15 = vector.load %arg5[%c0_5, %c0_6, %c0_7] : memref<1x8x32xbf16, #tpu.memory_space<vmem>>, vector<1x8x32xbf16>
    %16 = vector.shape_cast %15 : vector<1x8x32xbf16> to vector<8x32xbf16>
    %c0_8 = arith.constant 0 : index
    %c0_9 = arith.constant 0 : index
    %c0_10 = arith.constant 0 : index
    %17 = vector.load %arg8[%c0_8, %c0_9, %c0_10] : memref<1x8x32xf32, #tpu.memory_space<vmem>>, vector<1x8x32xf32>
    %18 = vector.shape_cast %17 : vector<1x8x32xf32> to vector<8x32xf32>
    %c0_11 = arith.constant 0 : index
    %c0_12 = arith.constant 0 : index
    %19 = vector.load %arg7[%c0_11, %c0_12] : memref<1x32xf32, #tpu.memory_space<vmem>>, vector<1x32xf32>
    %20 = vector.broadcast %19 : vector<1x32xf32> to vector<8x32xf32>
    %21 = arith.addf %18, %20 : vector<8x32xf32>
    %22 = vector.extract_strided_slice %12 {offsets = [0, 0], sizes = [8, 8], strides = [1, 1]} : vector<8x32xbf16> to vector<8x8xbf16>
    %23 = vector.extract_strided_slice %14 {offsets = [0, 0], sizes = [8, 8], strides = [1, 1]} : vector<8x32xbf16> to vector<8x8xbf16>
    %24 = vector.extract_strided_slice %16 {offsets = [0, 0], sizes = [8, 8], strides = [1, 1]} : vector<8x32xbf16> to vector<8x8xbf16>
    %cst = arith.constant dense<0.000000e+00> : vector<8x8xf32>
    %25 = tpu.matmul %22, %23, %cst {dimension_numbers = #tpu.dot_dimension_numbers<[1], [1], [0], [0], [0, 0, 1, 0], [], []>} : vector<8x8xbf16>, vector<8x8xbf16>, vector<8x8xf32> -> vector<8x8xf32>
    %cst_13 = arith.constant 0.353553385 : f32
    %26 = vector.broadcast %cst_13 : f32 to vector<8x8xf32>
    %27 = arith.mulf %25, %26 : vector<8x8xf32>
    %cst_14 = arith.constant -1.000000e+09 : f32
    %28 = vector.broadcast %cst_14 : f32 to vector<8x8xf32>
    %29 = arith.select %10, %27, %28 : vector<8x8xi1>, vector<8x8xf32>
    %cst_15 = arith.constant dense<0xFF800000> : vector<8xf32>
    %30 = vector.multi_reduction <maximumf>, %29, %cst_15 [1] : vector<8x8xf32> to vector<8xf32>
    %31 = vector.shape_cast %30 : vector<8xf32> to vector<8x1xf32>
    %32 = vector.broadcast %31 : vector<8x1xf32> to vector<8x8xf32>
    %33 = arith.subf %29, %32 : vector<8x8xf32>
    %34 = math.exp %33 : vector<8x8xf32>
    %cst_16 = arith.constant dense<0.000000e+00> : vector<8xf32>
    %35 = vector.multi_reduction <add>, %34, %cst_16 [1] : vector<8x8xf32> to vector<8xf32>
    %36 = vector.shape_cast %35 : vector<8xf32> to vector<8x1xf32>
    %37 = tpu.reciprocal %36 {approx = true} : vector<8x1xf32> -> vector<8x1xf32>
    %38 = vector.broadcast %37 : vector<8x1xf32> to vector<8x8xf32>
    %39 = arith.mulf %34, %38 : vector<8x8xf32>
    %40 = arith.truncf %39 : vector<8x8xf32> to vector<8x8xbf16>
    %cst_17 = arith.constant dense<0.000000e+00> : vector<8x8xf32>
    %41 = tpu.matmul %40, %24, %cst_17 {dimension_numbers = #tpu.dot_dimension_numbers<[1], [0], [0], [1], [0, 0, 1, 1], [], []>} : vector<8x8xbf16>, vector<8x8xbf16>, vector<8x8xf32> -> vector<8x8xf32>
    %42 = arith.truncf %41 : vector<8x8xf32> to vector<8x8xbf16>
    %c0_18 = arith.constant 0 : index
    %c0_19 = arith.constant 0 : index
    %43 = vector.load %arg6[%c0_18, %c0_19] : memref<32x32xbf16, #tpu.memory_space<vmem>>, vector<8x32xbf16>
    %cst_20 = arith.constant dense<0.000000e+00> : vector<8x32xf32>
    %44 = tpu.matmul %42, %43, %cst_20 {dimension_numbers = #tpu.dot_dimension_numbers<[1], [0], [0], [1], [0, 0, 1, 1], [], []>} : vector<8x8xbf16>, vector<8x32xbf16>, vector<8x32xf32> -> vector<8x32xf32>
    %45 = arith.addf %21, %44 : vector<8x32xf32>
    %46 = vector.extract_strided_slice %12 {offsets = [0, 8], sizes = [8, 8], strides = [1, 1]} : vector<8x32xbf16> to vector<8x8xbf16>
    %47 = vector.extract_strided_slice %14 {offsets = [0, 8], sizes = [8, 8], strides = [1, 1]} : vector<8x32xbf16> to vector<8x8xbf16>
    %48 = vector.extract_strided_slice %16 {offsets = [0, 8], sizes = [8, 8], strides = [1, 1]} : vector<8x32xbf16> to vector<8x8xbf16>
    %cst_21 = arith.constant dense<0.000000e+00> : vector<8x8xf32>
    %49 = tpu.matmul %46, %47, %cst_21 {dimension_numbers = #tpu.dot_dimension_numbers<[1], [1], [0], [0], [0, 0, 1, 0], [], []>} : vector<8x8xbf16>, vector<8x8xbf16>, vector<8x8xf32> -> vector<8x8xf32>
    %cst_22 = arith.constant 0.353553385 : f32
    %50 = vector.broadcast %cst_22 : f32 to vector<8x8xf32>
    %51 = arith.mulf %49, %50 : vector<8x8xf32>
    %cst_23 = arith.constant -1.000000e+09 : f32
    %52 = vector.broadcast %cst_23 : f32 to vector<8x8xf32>
    %53 = arith.select %10, %51, %52 : vector<8x8xi1>, vector<8x8xf32>
    %cst_24 = arith.constant dense<0xFF800000> : vector<8xf32>
    %54 = vector.multi_reduction <maximumf>, %53, %cst_24 [1] : vector<8x8xf32> to vector<8xf32>
    %55 = vector.shape_cast %54 : vector<8xf32> to vector<8x1xf32>
    %56 = vector.broadcast %55 : vector<8x1xf32> to vector<8x8xf32>
    %57 = arith.subf %53, %56 : vector<8x8xf32>
    %58 = math.exp %57 : vector<8x8xf32>
    %cst_25 = arith.constant dense<0.000000e+00> : vector<8xf32>
    %59 = vector.multi_reduction <add>, %58, %cst_25 [1] : vector<8x8xf32> to vector<8xf32>
    %60 = vector.shape_cast %59 : vector<8xf32> to vector<8x1xf32>
    %61 = tpu.reciprocal %60 {approx = true} : vector<8x1xf32> -> vector<8x1xf32>
    %62 = vector.broadcast %61 : vector<8x1xf32> to vector<8x8xf32>
    %63 = arith.mulf %58, %62 : vector<8x8xf32>
    %64 = arith.truncf %63 : vector<8x8xf32> to vector<8x8xbf16>
    %cst_26 = arith.constant dense<0.000000e+00> : vector<8x8xf32>
    %65 = tpu.matmul %64, %48, %cst_26 {dimension_numbers = #tpu.dot_dimension_numbers<[1], [0], [0], [1], [0, 0, 1, 1], [], []>} : vector<8x8xbf16>, vector<8x8xbf16>, vector<8x8xf32> -> vector<8x8xf32>
    %66 = arith.truncf %65 : vector<8x8xf32> to vector<8x8xbf16>
    %c8 = arith.constant 8 : index
    %c0_27 = arith.constant 0 : index
    %67 = vector.load %arg6[%c8, %c0_27] : memref<32x32xbf16, #tpu.memory_space<vmem>>, vector<8x32xbf16>
    %cst_28 = arith.constant dense<0.000000e+00> : vector<8x32xf32>
    %68 = tpu.matmul %66, %67, %cst_28 {dimension_numbers = #tpu.dot_dimension_numbers<[1], [0], [0], [1], [0, 0, 1, 1], [], []>} : vector<8x8xbf16>, vector<8x32xbf16>, vector<8x32xf32> -> vector<8x32xf32>
    %69 = arith.addf %45, %68 : vector<8x32xf32>
    %70 = vector.extract_strided_slice %12 {offsets = [0, 16], sizes = [8, 8], strides = [1, 1]} : vector<8x32xbf16> to vector<8x8xbf16>
    %71 = vector.extract_strided_slice %14 {offsets = [0, 16], sizes = [8, 8], strides = [1, 1]} : vector<8x32xbf16> to vector<8x8xbf16>
    %72 = vector.extract_strided_slice %16 {offsets = [0, 16], sizes = [8, 8], strides = [1, 1]} : vector<8x32xbf16> to vector<8x8xbf16>
    %cst_29 = arith.constant dense<0.000000e+00> : vector<8x8xf32>
    %73 = tpu.matmul %70, %71, %cst_29 {dimension_numbers = #tpu.dot_dimension_numbers<[1], [1], [0], [0], [0, 0, 1, 0], [], []>} : vector<8x8xbf16>, vector<8x8xbf16>, vector<8x8xf32> -> vector<8x8xf32>
    %cst_30 = arith.constant 0.353553385 : f32
    %74 = vector.broadcast %cst_30 : f32 to vector<8x8xf32>
    %75 = arith.mulf %73, %74 : vector<8x8xf32>
    %cst_31 = arith.constant -1.000000e+09 : f32
    %76 = vector.broadcast %cst_31 : f32 to vector<8x8xf32>
    %77 = arith.select %10, %75, %76 : vector<8x8xi1>, vector<8x8xf32>
    %cst_32 = arith.constant dense<0xFF800000> : vector<8xf32>
    %78 = vector.multi_reduction <maximumf>, %77, %cst_32 [1] : vector<8x8xf32> to vector<8xf32>
    %79 = vector.shape_cast %78 : vector<8xf32> to vector<8x1xf32>
    %80 = vector.broadcast %79 : vector<8x1xf32> to vector<8x8xf32>
    %81 = arith.subf %77, %80 : vector<8x8xf32>
    %82 = math.exp %81 : vector<8x8xf32>
    %cst_33 = arith.constant dense<0.000000e+00> : vector<8xf32>
    %83 = vector.multi_reduction <add>, %82, %cst_33 [1] : vector<8x8xf32> to vector<8xf32>
    %84 = vector.shape_cast %83 : vector<8xf32> to vector<8x1xf32>
    %85 = tpu.reciprocal %84 {approx = true} : vector<8x1xf32> -> vector<8x1xf32>
    %86 = vector.broadcast %85 : vector<8x1xf32> to vector<8x8xf32>
    %87 = arith.mulf %82, %86 : vector<8x8xf32>
    %88 = arith.truncf %87 : vector<8x8xf32> to vector<8x8xbf16>
    %cst_34 = arith.constant dense<0.000000e+00> : vector<8x8xf32>
    %89 = tpu.matmul %88, %72, %cst_34 {dimension_numbers = #tpu.dot_dimension_numbers<[1], [0], [0], [1], [0, 0, 1, 1], [], []>} : vector<8x8xbf16>, vector<8x8xbf16>, vector<8x8xf32> -> vector<8x8xf32>
    %90 = arith.truncf %89 : vector<8x8xf32> to vector<8x8xbf16>
    %c16 = arith.constant 16 : index
    %c0_35 = arith.constant 0 : index
    %91 = vector.load %arg6[%c16, %c0_35] : memref<32x32xbf16, #tpu.memory_space<vmem>>, vector<8x32xbf16>
    %cst_36 = arith.constant dense<0.000000e+00> : vector<8x32xf32>
    %92 = tpu.matmul %90, %91, %cst_36 {dimension_numbers = #tpu.dot_dimension_numbers<[1], [0], [0], [1], [0, 0, 1, 1], [], []>} : vector<8x8xbf16>, vector<8x32xbf16>, vector<8x32xf32> -> vector<8x32xf32>
    %93 = arith.addf %69, %92 : vector<8x32xf32>
    %94 = vector.extract_strided_slice %12 {offsets = [0, 24], sizes = [8, 8], strides = [1, 1]} : vector<8x32xbf16> to vector<8x8xbf16>
    %95 = vector.extract_strided_slice %14 {offsets = [0, 24], sizes = [8, 8], strides = [1, 1]} : vector<8x32xbf16> to vector<8x8xbf16>
    %96 = vector.extract_strided_slice %16 {offsets = [0, 24], sizes = [8, 8], strides = [1, 1]} : vector<8x32xbf16> to vector<8x8xbf16>
    %cst_37 = arith.constant dense<0.000000e+00> : vector<8x8xf32>
    %97 = tpu.matmul %94, %95, %cst_37 {dimension_numbers = #tpu.dot_dimension_numbers<[1], [1], [0], [0], [0, 0, 1, 0], [], []>} : vector<8x8xbf16>, vector<8x8xbf16>, vector<8x8xf32> -> vector<8x8xf32>
    %cst_38 = arith.constant 0.353553385 : f32
    %98 = vector.broadcast %cst_38 : f32 to vector<8x8xf32>
    %99 = arith.mulf %97, %98 : vector<8x8xf32>
    %cst_39 = arith.constant -1.000000e+09 : f32
    %100 = vector.broadcast %cst_39 : f32 to vector<8x8xf32>
    %101 = arith.select %10, %99, %100 : vector<8x8xi1>, vector<8x8xf32>
    %cst_40 = arith.constant dense<0xFF800000> : vector<8xf32>
    %102 = vector.multi_reduction <maximumf>, %101, %cst_40 [1] : vector<8x8xf32> to vector<8xf32>
    %103 = vector.shape_cast %102 : vector<8xf32> to vector<8x1xf32>
    %104 = vector.broadcast %103 : vector<8x1xf32> to vector<8x8xf32>
    %105 = arith.subf %101, %104 : vector<8x8xf32>
    %106 = math.exp %105 : vector<8x8xf32>
    %cst_41 = arith.constant dense<0.000000e+00> : vector<8xf32>
    %107 = vector.multi_reduction <add>, %106, %cst_41 [1] : vector<8x8xf32> to vector<8xf32>
    %108 = vector.shape_cast %107 : vector<8xf32> to vector<8x1xf32>
    %109 = tpu.reciprocal %108 {approx = true} : vector<8x1xf32> -> vector<8x1xf32>
    %110 = vector.broadcast %109 : vector<8x1xf32> to vector<8x8xf32>
    %111 = arith.mulf %106, %110 : vector<8x8xf32>
    %112 = arith.truncf %111 : vector<8x8xf32> to vector<8x8xbf16>
    %cst_42 = arith.constant dense<0.000000e+00> : vector<8x8xf32>
    %113 = tpu.matmul %112, %96, %cst_42 {dimension_numbers = #tpu.dot_dimension_numbers<[1], [0], [0], [1], [0, 0, 1, 1], [], []>} : vector<8x8xbf16>, vector<8x8xbf16>, vector<8x8xf32> -> vector<8x8xf32>
    %114 = arith.truncf %113 : vector<8x8xf32> to vector<8x8xbf16>
    %c24 = arith.constant 24 : index
    %c0_43 = arith.constant 0 : index
    %115 = vector.load %arg6[%c24, %c0_43] : memref<32x32xbf16, #tpu.memory_space<vmem>>, vector<8x32xbf16>
    %cst_44 = arith.constant dense<0.000000e+00> : vector<8x32xf32>
    %116 = tpu.matmul %114, %115, %cst_44 {dimension_numbers = #tpu.dot_dimension_numbers<[1], [0], [0], [1], [0, 0, 1, 1], [], []>} : vector<8x8xbf16>, vector<8x32xbf16>, vector<8x32xf32> -> vector<8x32xf32>
    %117 = arith.addf %93, %116 : vector<8x32xf32>
    %c0_45 = arith.constant 0 : index
    %c0_46 = arith.constant 0 : index
    %c0_47 = arith.constant 0 : index
    %118 = vector.load %arg9[%c0_45, %c0_46, %c0_47] : memref<1x8x32xf32, #tpu.memory_space<vmem>>, vector<1x8x32xf32>
    %119 = vector.shape_cast %118 : vector<1x8x32xf32> to vector<8x32xf32>
    %120 = vector.shape_cast %117 : vector<8x32xf32> to vector<1x8x32xf32>
    tpu.vector_store %arg9[%c0_45, %c0_46, %c0_47], %120 {strides = array<i32>} : memref<1x8x32xf32, #tpu.memory_space<vmem>>, vector<1x8x32xf32>,
    return
  }
  func.func @transform_0(%arg0: i32, %arg1: i32, %arg2: memref<2xi32, #tpu.memory_space<smem>>) -> (i32, i32, i32) {
    %c0_i32 = arith.constant 0 : i32
    %c0_i32_0 = arith.constant 0 : i32
    return %arg0, %arg1, %c0_i32 : i32, i32, i32
  }
  func.func @transform_1(%arg0: i32, %arg1: i32, %arg2: memref<2xi32, #tpu.memory_space<smem>>) -> (i32, i32, i32) {
    %c0_i32 = arith.constant 0 : i32
    %c0_i32_0 = arith.constant 0 : i32
    %c0_i32_1 = arith.constant 0 : i32
    return %arg0, %c0_i32, %c0_i32_0 : i32, i32, i32
  }
  func.func @transform_2(%arg0: i32, %arg1: i32, %arg2: memref<2xi32, #tpu.memory_space<smem>>) -> (i32, i32, i32) {
    %c0_i32 = arith.constant 0 : i32
    %c0_i32_0 = arith.constant 0 : i32
    %c0_i32_1 = arith.constant 0 : i32
    return %arg0, %c0_i32, %c0_i32_0 : i32, i32, i32
  }
  func.func @transform_3(%arg0: i32, %arg1: i32, %arg2: memref<2xi32, #tpu.memory_space<smem>>) -> (i32, i32) {
    %c0_i32 = arith.constant 0 : i32
    %c0_i32_0 = arith.constant 0 : i32
    %c0_i32_1 = arith.constant 0 : i32
    return %c0_i32, %c0_i32_0 : i32, i32
  }
  func.func @transform_4(%arg0: i32, %arg1: i32, %arg2: memref<2xi32, #tpu.memory_space<smem>>) -> (i32, i32) {
    %c0_i32 = arith.constant 0 : i32
    %c0_i32_0 = arith.constant 0 : i32
    %c0_i32_1 = arith.constant 0 : i32
    return %c0_i32, %c0_i32_0 : i32, i32
  }
  func.func @transform_5(%arg0: i32, %arg1: i32, %arg2: memref<2xi32, #tpu.memory_space<smem>>) -> (i32, i32, i32) {
    %c0_i32 = arith.constant 0 : i32
    %c0_i32_0 = arith.constant 0 : i32
    return %arg0, %arg1, %c0_i32 : i32, i32, i32
  }
  func.func @transform_6(%arg0: i32, %arg1: i32, %arg2: memref<2xi32, #tpu.memory_space<smem>>) -> (i32, i32, i32) {
    %c0_i32 = arith.constant 0 : i32
    %c0_i32_0 = arith.constant 0 : i32
    return %arg0, %arg1, %c0_i32 : i32, i32, i32
  }
}

module attributes {stable_mosaic.version = 11 : i64} {
  func.func @ln_ffn_residual_kernel(%arg0: i32, %arg1: i32, %arg2: memref<16x32xf32, #tpu.memory_space<vmem>>, %arg3: memref<1x32xf32, #tpu.memory_space<vmem>>, %arg4: memref<1x32xf32, #tpu.memory_space<vmem>>, %arg5: memref<32x64xbf16, #tpu.memory_space<vmem>>, %arg6: memref<1x64xf32, #tpu.memory_space<vmem>>, %arg7: memref<64x32xbf16, #tpu.memory_space<vmem>>, %arg8: memref<1x32xf32, #tpu.memory_space<vmem>>, %arg9: memref<16x32xf32, #tpu.memory_space<vmem>>, %arg10: memref<16x32xbf16, #tpu.memory_space<vmem>>, %arg11: memref<16x32xf32, #tpu.memory_space<vmem>>) attributes {dimension_semantics = [#tpu.dimension_semantics<parallel>, #tpu.dimension_semantics<arbitrary>], iteration_bounds = array<i64: 1, 1>, scalar_prefetch = 0 : i64, scratch_operands = 2 : i64, tpu.core_type = #tpu.core_type<tc>, window_params = [{transform_indices = @transform_0, window_bounds = array<i64: 16, 32>}, {pipeline_mode = #tpu.pipeline_mode<synchronous>, transform_indices = @transform_1, window_bounds = array<i64: 1, 32>}, {pipeline_mode = #tpu.pipeline_mode<synchronous>, transform_indices = @transform_2, window_bounds = array<i64: 1, 32>}, {transform_indices = @transform_3, window_bounds = array<i64: 32, 64>}, {transform_indices = @transform_4, window_bounds = array<i64: 1, 64>}, {transform_indices = @transform_5, window_bounds = array<i64: 64, 32>}, {pipeline_mode = #tpu.pipeline_mode<synchronous>, transform_indices = @transform_6, window_bounds = array<i64: 1, 32>}, {transform_indices = @transform_7, window_bounds = array<i64: 16, 32>}]} {
    %c0_i32 = arith.constant 0 : i32
    %0 = arith.cmpi eq, %arg1, %c0_i32 : i32
    %1 = arith.extui %0 : i1 to i32
    %c0_i32_0 = arith.constant 0 : i32
    %2 = arith.cmpi ne, %1, %c0_i32_0 : i32
    scf.if %2 {
      %c0_16 = arith.constant 0 : index
      %c0_17 = arith.constant 0 : index
      %20 = vector.load %arg2[%c0_16, %c0_17] : memref<16x32xf32, #tpu.memory_space<vmem>>, vector<16x32xf32>
      %c0_18 = arith.constant 0 : index
      %c0_19 = arith.constant 0 : index
      %21 = vector.load %arg3[%c0_18, %c0_19] : memref<1x32xf32, #tpu.memory_space<vmem>>, vector<1x32xf32>
      %c0_20 = arith.constant 0 : index
      %c0_21 = arith.constant 0 : index
      %22 = vector.load %arg4[%c0_20, %c0_21] : memref<1x32xf32, #tpu.memory_space<vmem>>, vector<1x32xf32>
      %cst_22 = arith.constant dense<0.000000e+00> : vector<16xf32>
      %23 = vector.multi_reduction <add>, %20, %cst_22 [1] : vector<16x32xf32> to vector<16xf32>
      %24 = vector.shape_cast %23 : vector<16xf32> to vector<16x1xf32>
      %cst_23 = arith.constant 3.200000e+01 : f32
      %25 = vector.broadcast %cst_23 : f32 to vector<16x1xf32>
      %26 = arith.divf %24, %25 : vector<16x1xf32>
      %27 = vector.broadcast %26 : vector<16x1xf32> to vector<16x32xf32>
      %28 = arith.subf %20, %27 : vector<16x32xf32>
      %29 = arith.mulf %28, %28 : vector<16x32xf32>
      %cst_24 = arith.constant dense<0.000000e+00> : vector<16xf32>
      %30 = vector.multi_reduction <add>, %29, %cst_24 [1] : vector<16x32xf32> to vector<16xf32>
      %31 = vector.shape_cast %30 : vector<16xf32> to vector<16x1xf32>
      %cst_25 = arith.constant 0.0322580636 : f32
      %32 = vector.broadcast %cst_25 : f32 to vector<16x1xf32>
      %33 = arith.mulf %31, %32 : vector<16x1xf32>
      %34 = math.sqrt %33 : vector<16x1xf32>
      %cst_26 = arith.constant 9.99999997E-7 : f32
      %35 = vector.broadcast %cst_26 : f32 to vector<16x1xf32>
      %36 = arith.addf %34, %35 : vector<16x1xf32>
      %37 = tpu.reciprocal %36 {approx = true} : vector<16x1xf32> -> vector<16x1xf32>
      %38 = vector.broadcast %37 : vector<16x1xf32> to vector<16x32xf32>
      %39 = arith.mulf %28, %38 : vector<16x32xf32>
      %40 = vector.broadcast %21 : vector<1x32xf32> to vector<16x32xf32>
      %41 = arith.mulf %39, %40 : vector<16x32xf32>
      %42 = vector.broadcast %22 : vector<1x32xf32> to vector<16x32xf32>
      %43 = arith.addf %41, %42 : vector<16x32xf32>
      %44 = arith.truncf %43 : vector<16x32xf32> to vector<16x32xbf16>
      %c0_27 = arith.constant 0 : index
      %c0_28 = arith.constant 0 : index
      %45 = vector.load %arg10[%c0_27, %c0_28] : memref<16x32xbf16, #tpu.memory_space<vmem>>, vector<16x32xbf16>
      tpu.vector_store %arg10[%c0_27, %c0_28], %44 {strides = array<i32>} : memref<16x32xbf16, #tpu.memory_space<vmem>>, vector<16x32xbf16>,
      %c0_29 = arith.constant 0 : index
      %c0_30 = arith.constant 0 : index
      %46 = vector.load %arg8[%c0_29, %c0_30] : memref<1x32xf32, #tpu.memory_space<vmem>>, vector<1x32xf32>
      %47 = vector.broadcast %46 : vector<1x32xf32> to vector<16x32xf32>
      %48 = arith.addf %20, %47 : vector<16x32xf32>
      %c0_31 = arith.constant 0 : index
      %c0_32 = arith.constant 0 : index
      %49 = vector.load %arg11[%c0_31, %c0_32] : memref<16x32xf32, #tpu.memory_space<vmem>>, vector<16x32xf32>
      tpu.vector_store %arg11[%c0_31, %c0_32], %48 {strides = array<i32>} : memref<16x32xf32, #tpu.memory_space<vmem>>, vector<16x32xf32>,
    } else {
    }
    %c0 = arith.constant 0 : index
    %c0_1 = arith.constant 0 : index
    %3 = vector.load %arg10[%c0, %c0_1] : memref<16x32xbf16, #tpu.memory_space<vmem>>, vector<16x32xbf16>
    %c0_2 = arith.constant 0 : index
    %c0_3 = arith.constant 0 : index
    %4 = vector.load %arg5[%c0_2, %c0_3] : memref<32x64xbf16, #tpu.memory_space<vmem>>, vector<32x64xbf16>
    %cst = arith.constant dense<0.000000e+00> : vector<16x64xf32>
    %5 = tpu.matmul %3, %4, %cst {dimension_numbers = #tpu.dot_dimension_numbers<[1], [0], [0], [1], [0, 0, 1, 1], [], []>} : vector<16x32xbf16>, vector<32x64xbf16>, vector<16x64xf32> -> vector<16x64xf32>
    %c0_4 = arith.constant 0 : index
    %c0_5 = arith.constant 0 : index
    %6 = vector.load %arg6[%c0_4, %c0_5] : memref<1x64xf32, #tpu.memory_space<vmem>>, vector<1x64xf32>
    %7 = vector.broadcast %6 : vector<1x64xf32> to vector<16x64xf32>
    %8 = arith.addf %5, %7 : vector<16x64xf32>
    %cst_6 = arith.constant 0.000000e+00 : f32
    %9 = vector.broadcast %cst_6 : f32 to vector<16x64xf32>
    %10 = arith.maximumf %8, %9 : vector<16x64xf32>
    %c0_7 = arith.constant 0 : index
    %c0_8 = arith.constant 0 : index
    %11 = vector.load %arg11[%c0_7, %c0_8] : memref<16x32xf32, #tpu.memory_space<vmem>>, vector<16x32xf32>
    %12 = arith.truncf %10 : vector<16x64xf32> to vector<16x64xbf16>
    %c0_9 = arith.constant 0 : index
    %c0_10 = arith.constant 0 : index
    %13 = vector.load %arg7[%c0_9, %c0_10] : memref<64x32xbf16, #tpu.memory_space<vmem>>, vector<64x32xbf16>
    %cst_11 = arith.constant dense<0.000000e+00> : vector<16x32xf32>
    %14 = tpu.matmul %12, %13, %cst_11 {dimension_numbers = #tpu.dot_dimension_numbers<[1], [0], [0], [1], [0, 0, 1, 1], [], []>} : vector<16x64xbf16>, vector<64x32xbf16>, vector<16x32xf32> -> vector<16x32xf32>
    %15 = arith.addf %11, %14 : vector<16x32xf32>
    %c0_12 = arith.constant 0 : index
    %c0_13 = arith.constant 0 : index
    %16 = vector.load %arg11[%c0_12, %c0_13] : memref<16x32xf32, #tpu.memory_space<vmem>>, vector<16x32xf32>
    tpu.vector_store %arg11[%c0_12, %c0_13], %15 {strides = array<i32>} : memref<16x32xf32, #tpu.memory_space<vmem>>, vector<16x32xf32>,
    %c0_i32_14 = arith.constant 0 : i32
    %17 = arith.cmpi eq, %arg1, %c0_i32_14 : i32
    %18 = arith.extui %17 : i1 to i32
    %c0_i32_15 = arith.constant 0 : i32
    %19 = arith.cmpi ne, %18, %c0_i32_15 : i32
    scf.if %19 {
      %c0_16 = arith.constant 0 : index
      %c0_17 = arith.constant 0 : index
      %20 = vector.load %arg11[%c0_16, %c0_17] : memref<16x32xf32, #tpu.memory_space<vmem>>, vector<16x32xf32>
      %c0_18 = arith.constant 0 : index
      %c0_19 = arith.constant 0 : index
      %21 = vector.load %arg9[%c0_18, %c0_19] : memref<16x32xf32, #tpu.memory_space<vmem>>, vector<16x32xf32>
      tpu.vector_store %arg9[%c0_18, %c0_19], %20 {strides = array<i32>} : memref<16x32xf32, #tpu.memory_space<vmem>>, vector<16x32xf32>,
    } else {
    }
    return
  }
  func.func @transform_0(%arg0: i32, %arg1: i32) -> (i32, i32) {
    %c0_i32 = arith.constant 0 : i32
    %c0_i32_0 = arith.constant 0 : i32
    return %arg0, %c0_i32 : i32, i32
  }
  func.func @transform_1(%arg0: i32, %arg1: i32) -> (i32, i32) {
    %c0_i32 = arith.constant 0 : i32
    %c0_i32_0 = arith.constant 0 : i32
    %c0_i32_1 = arith.constant 0 : i32
    return %c0_i32, %c0_i32_0 : i32, i32
  }
  func.func @transform_2(%arg0: i32, %arg1: i32) -> (i32, i32) {
    %c0_i32 = arith.constant 0 : i32
    %c0_i32_0 = arith.constant 0 : i32
    %c0_i32_1 = arith.constant 0 : i32
    return %c0_i32, %c0_i32_0 : i32, i32
  }
  func.func @transform_3(%arg0: i32, %arg1: i32) -> (i32, i32) {
    %c0_i32 = arith.constant 0 : i32
    %c0_i32_0 = arith.constant 0 : i32
    return %c0_i32, %arg1 : i32, i32
  }
  func.func @transform_4(%arg0: i32, %arg1: i32) -> (i32, i32) {
    %c0_i32 = arith.constant 0 : i32
    %c0_i32_0 = arith.constant 0 : i32
    return %c0_i32, %arg1 : i32, i32
  }
  func.func @transform_5(%arg0: i32, %arg1: i32) -> (i32, i32) {
    %c0_i32 = arith.constant 0 : i32
    %c0_i32_0 = arith.constant 0 : i32
    return %arg1, %c0_i32 : i32, i32
  }
  func.func @transform_6(%arg0: i32, %arg1: i32) -> (i32, i32) {
    %c0_i32 = arith.constant 0 : i32
    %c0_i32_0 = arith.constant 0 : i32
    %c0_i32_1 = arith.constant 0 : i32
    return %c0_i32, %c0_i32_0 : i32, i32
  }
  func.func @transform_7(%arg0: i32, %arg1: i32) -> (i32, i32) {
    %c0_i32 = arith.constant 0 : i32
    %c0_i32_0 = arith.constant 0 : i32
    return %arg0, %c0_i32 : i32, i32
  }
}

module attributes {stable_mosaic.version = 11 : i64} {
  func.func @mha_kernel(%arg0: i32, %arg1: i32, %arg2: memref<2xi32, #tpu.memory_space<smem>>, %arg3: memref<1x8x32xbf16, #tpu.memory_space<vmem>>, %arg4: memref<1x16x32xbf16, #tpu.memory_space<vmem>>, %arg5: memref<1x16x32xbf16, #tpu.memory_space<vmem>>, %arg6: memref<32x32xbf16, #tpu.memory_space<vmem>>, %arg7: memref<1x32xf32, #tpu.memory_space<vmem>>, %arg8: memref<1x8x32xf32, #tpu.memory_space<vmem>>, %arg9: memref<1x8x32xf32, #tpu.memory_space<vmem>>) attributes {dimension_semantics = [#tpu.dimension_semantics<parallel>, #tpu.dimension_semantics<parallel>], iteration_bounds = array<i64: 2, 1>, scalar_prefetch = 1 : i64, scratch_operands = 0 : i64, tpu.core_type = #tpu.core_type<tc>, window_params = [{transform_indices = @transform_0, window_bounds = array<i64: 1, 8, 32>}, {transform_indices = @transform_1, window_bounds = array<i64: 1, 16, 32>}, {transform_indices = @transform_2, window_bounds = array<i64: 1, 16, 32>}, {pipeline_mode = #tpu.pipeline_mode<synchronous>, transform_indices = @transform_3, window_bounds = array<i64: 32, 32>}, {pipeline_mode = #tpu.pipeline_mode<synchronous>, transform_indices = @transform_4, window_bounds = array<i64: 1, 32>}, {transform_indices = @transform_5, window_bounds = array<i64: 1, 8, 32>}, {transform_indices = @transform_6, window_bounds = array<i64: 1, 8, 32>}]} {
    %0 = arith.index_cast %arg0 : i32 to index
    %1 = memref.load %arg2[%0] : memref<2xi32, #tpu.memory_space<smem>>
    %2 = tpu.iota {dimensions = array<i32: 1>} : vector<8x16xi32>
    %3 = vector.broadcast %1 : i32 to vector<8x16xi32>
    %4 = arith.cmpi slt, %2, %3 : vector<8x16xi32>
    %c0 = arith.constant 0 : index
    %c0_0 = arith.constant 0 : index
    %c0_1 = arith.constant 0 : index
    %5 = vector.load %arg3[%c0, %c0_0, %c0_1] : memref<1x8x32xbf16, #tpu.memory_space<vmem>>, vector<1x8x32xbf16>
    %6 = vector.shape_cast %5 : vector<1x8x32xbf16> to vector<8x32xbf16>
    %c0_2 = arith.constant 0 : index
    %c0_3 = arith.constant 0 : index
    %c0_4 = arith.constant 0 : index
    %7 = vector.load %arg4[%c0_2, %c0_3, %c0_4] : memref<1x16x32xbf16, #tpu.memory_space<vmem>>, vector<1x16x32xbf16>
    %8 = vector.shape_cast %7 : vector<1x16x32xbf16> to vector<16x32xbf16>
    %c0_5 = arith.constant 0 : index
    %c0_6 = arith.constant 0 : index
    %c0_7 = arith.constant 0 : index
    %9 = vector.load %arg5[%c0_5, %c0_6, %c0_7] : memref<1x16x32xbf16, #tpu.memory_space<vmem>>, vector<1x16x32xbf16>
    %10 = vector.shape_cast %9 : vector<1x16x32xbf16> to vector<16x32xbf16>
    %c0_8 = arith.constant 0 : index
    %c0_9 = arith.constant 0 : index
    %c0_10 = arith.constant 0 : index
    %11 = vector.load %arg8[%c0_8, %c0_9, %c0_10] : memref<1x8x32xf32, #tpu.memory_space<vmem>>, vector<1x8x32xf32>
    %12 = vector.shape_cast %11 : vector<1x8x32xf32> to vector<8x32xf32>
    %c0_11 = arith.constant 0 : index
    %c0_12 = arith.constant 0 : index
    %13 = vector.load %arg7[%c0_11, %c0_12] : memref<1x32xf32, #tpu.memory_space<vmem>>, vector<1x32xf32>
    %14 = vector.broadcast %13 : vector<1x32xf32> to vector<8x32xf32>
    %15 = arith.addf %12, %14 : vector<8x32xf32>
    %16 = vector.extract_strided_slice %6 {offsets = [0, 0], sizes = [8, 8], strides = [1, 1]} : vector<8x32xbf16> to vector<8x8xbf16>
    %17 = vector.extract_strided_slice %8 {offsets = [0, 0], sizes = [16, 8], strides = [1, 1]} : vector<16x32xbf16> to vector<16x8xbf16>
    %18 = vector.extract_strided_slice %10 {offsets = [0, 0], sizes = [16, 8], strides = [1, 1]} : vector<16x32xbf16> to vector<16x8xbf16>
    %cst = arith.constant dense<0.000000e+00> : vector<8x16xf32>
    %19 = tpu.matmul %16, %17, %cst {dimension_numbers = #tpu.dot_dimension_numbers<[1], [1], [0], [0], [0, 0, 1, 0], [], []>} : vector<8x8xbf16>, vector<16x8xbf16>, vector<8x16xf32> -> vector<8x16xf32>
    %cst_13 = arith.constant 0.353553385 : f32
    %20 = vector.broadcast %cst_13 : f32 to vector<8x16xf32>
    %21 = arith.mulf %19, %20 : vector<8x16xf32>
    %cst_14 = arith.constant -1.000000e+09 : f32
    %22 = vector.broadcast %cst_14 : f32 to vector<8x16xf32>
    %23 = arith.select %4, %21, %22 : vector<8x16xi1>, vector<8x16xf32>
    %cst_15 = arith.constant dense<0xFF800000> : vector<8xf32>
    %24 = vector.multi_reduction <maximumf>, %23, %cst_15 [1] : vector<8x16xf32> to vector<8xf32>
    %25 = vector.shape_cast %24 : vector<8xf32> to vector<8x1xf32>
    %26 = vector.broadcast %25 : vector<8x1xf32> to vector<8x16xf32>
    %27 = arith.subf %23, %26 : vector<8x16xf32>
    %28 = math.exp %27 : vector<8x16xf32>
    %cst_16 = arith.constant dense<0.000000e+00> : vector<8xf32>
    %29 = vector.multi_reduction <add>, %28, %cst_16 [1] : vector<8x16xf32> to vector<8xf32>
    %30 = vector.shape_cast %29 : vector<8xf32> to vector<8x1xf32>
    %31 = tpu.reciprocal %30 {approx = true} : vector<8x1xf32> -> vector<8x1xf32>
    %32 = vector.broadcast %31 : vector<8x1xf32> to vector<8x16xf32>
    %33 = arith.mulf %28, %32 : vector<8x16xf32>
    %34 = arith.truncf %33 : vector<8x16xf32> to vector<8x16xbf16>
    %cst_17 = arith.constant dense<0.000000e+00> : vector<8x8xf32>
    %35 = tpu.matmul %34, %18, %cst_17 {dimension_numbers = #tpu.dot_dimension_numbers<[1], [0], [0], [1], [0, 0, 1, 1], [], []>} : vector<8x16xbf16>, vector<16x8xbf16>, vector<8x8xf32> -> vector<8x8xf32>
    %36 = arith.truncf %35 : vector<8x8xf32> to vector<8x8xbf16>
    %c0_18 = arith.constant 0 : index
    %c0_19 = arith.constant 0 : index
    %37 = vector.load %arg6[%c0_18, %c0_19] : memref<32x32xbf16, #tpu.memory_space<vmem>>, vector<8x32xbf16>
    %cst_20 = arith.constant dense<0.000000e+00> : vector<8x32xf32>
    %38 = tpu.matmul %36, %37, %cst_20 {dimension_numbers = #tpu.dot_dimension_numbers<[1], [0], [0], [1], [0, 0, 1, 1], [], []>} : vector<8x8xbf16>, vector<8x32xbf16>, vector<8x32xf32> -> vector<8x32xf32>
    %39 = arith.addf %15, %38 : vector<8x32xf32>
    %40 = vector.extract_strided_slice %6 {offsets = [0, 8], sizes = [8, 8], strides = [1, 1]} : vector<8x32xbf16> to vector<8x8xbf16>
    %41 = vector.extract_strided_slice %8 {offsets = [0, 8], sizes = [16, 8], strides = [1, 1]} : vector<16x32xbf16> to vector<16x8xbf16>
    %42 = vector.extract_strided_slice %10 {offsets = [0, 8], sizes = [16, 8], strides = [1, 1]} : vector<16x32xbf16> to vector<16x8xbf16>
    %cst_21 = arith.constant dense<0.000000e+00> : vector<8x16xf32>
    %43 = tpu.matmul %40, %41, %cst_21 {dimension_numbers = #tpu.dot_dimension_numbers<[1], [1], [0], [0], [0, 0, 1, 0], [], []>} : vector<8x8xbf16>, vector<16x8xbf16>, vector<8x16xf32> -> vector<8x16xf32>
    %cst_22 = arith.constant 0.353553385 : f32
    %44 = vector.broadcast %cst_22 : f32 to vector<8x16xf32>
    %45 = arith.mulf %43, %44 : vector<8x16xf32>
    %cst_23 = arith.constant -1.000000e+09 : f32
    %46 = vector.broadcast %cst_23 : f32 to vector<8x16xf32>
    %47 = arith.select %4, %45, %46 : vector<8x16xi1>, vector<8x16xf32>
    %cst_24 = arith.constant dense<0xFF800000> : vector<8xf32>
    %48 = vector.multi_reduction <maximumf>, %47, %cst_24 [1] : vector<8x16xf32> to vector<8xf32>
    %49 = vector.shape_cast %48 : vector<8xf32> to vector<8x1xf32>
    %50 = vector.broadcast %49 : vector<8x1xf32> to vector<8x16xf32>
    %51 = arith.subf %47, %50 : vector<8x16xf32>
    %52 = math.exp %51 : vector<8x16xf32>
    %cst_25 = arith.constant dense<0.000000e+00> : vector<8xf32>
    %53 = vector.multi_reduction <add>, %52, %cst_25 [1] : vector<8x16xf32> to vector<8xf32>
    %54 = vector.shape_cast %53 : vector<8xf32> to vector<8x1xf32>
    %55 = tpu.reciprocal %54 {approx = true} : vector<8x1xf32> -> vector<8x1xf32>
    %56 = vector.broadcast %55 : vector<8x1xf32> to vector<8x16xf32>
    %57 = arith.mulf %52, %56 : vector<8x16xf32>
    %58 = arith.truncf %57 : vector<8x16xf32> to vector<8x16xbf16>
    %cst_26 = arith.constant dense<0.000000e+00> : vector<8x8xf32>
    %59 = tpu.matmul %58, %42, %cst_26 {dimension_numbers = #tpu.dot_dimension_numbers<[1], [0], [0], [1], [0, 0, 1, 1], [], []>} : vector<8x16xbf16>, vector<16x8xbf16>, vector<8x8xf32> -> vector<8x8xf32>
    %60 = arith.truncf %59 : vector<8x8xf32> to vector<8x8xbf16>
    %c8 = arith.constant 8 : index
    %c0_27 = arith.constant 0 : index
    %61 = vector.load %arg6[%c8, %c0_27] : memref<32x32xbf16, #tpu.memory_space<vmem>>, vector<8x32xbf16>
    %cst_28 = arith.constant dense<0.000000e+00> : vector<8x32xf32>
    %62 = tpu.matmul %60, %61, %cst_28 {dimension_numbers = #tpu.dot_dimension_numbers<[1], [0], [0], [1], [0, 0, 1, 1], [], []>} : vector<8x8xbf16>, vector<8x32xbf16>, vector<8x32xf32> -> vector<8x32xf32>
    %63 = arith.addf %39, %62 : vector<8x32xf32>
    %64 = vector.extract_strided_slice %6 {offsets = [0, 16], sizes = [8, 8], strides = [1, 1]} : vector<8x32xbf16> to vector<8x8xbf16>
    %65 = vector.extract_strided_slice %8 {offsets = [0, 16], sizes = [16, 8], strides = [1, 1]} : vector<16x32xbf16> to vector<16x8xbf16>
    %66 = vector.extract_strided_slice %10 {offsets = [0, 16], sizes = [16, 8], strides = [1, 1]} : vector<16x32xbf16> to vector<16x8xbf16>
    %cst_29 = arith.constant dense<0.000000e+00> : vector<8x16xf32>
    %67 = tpu.matmul %64, %65, %cst_29 {dimension_numbers = #tpu.dot_dimension_numbers<[1], [1], [0], [0], [0, 0, 1, 0], [], []>} : vector<8x8xbf16>, vector<16x8xbf16>, vector<8x16xf32> -> vector<8x16xf32>
    %cst_30 = arith.constant 0.353553385 : f32
    %68 = vector.broadcast %cst_30 : f32 to vector<8x16xf32>
    %69 = arith.mulf %67, %68 : vector<8x16xf32>
    %cst_31 = arith.constant -1.000000e+09 : f32
    %70 = vector.broadcast %cst_31 : f32 to vector<8x16xf32>
    %71 = arith.select %4, %69, %70 : vector<8x16xi1>, vector<8x16xf32>
    %cst_32 = arith.constant dense<0xFF800000> : vector<8xf32>
    %72 = vector.multi_reduction <maximumf>, %71, %cst_32 [1] : vector<8x16xf32> to vector<8xf32>
    %73 = vector.shape_cast %72 : vector<8xf32> to vector<8x1xf32>
    %74 = vector.broadcast %73 : vector<8x1xf32> to vector<8x16xf32>
    %75 = arith.subf %71, %74 : vector<8x16xf32>
    %76 = math.exp %75 : vector<8x16xf32>
    %cst_33 = arith.constant dense<0.000000e+00> : vector<8xf32>
    %77 = vector.multi_reduction <add>, %76, %cst_33 [1] : vector<8x16xf32> to vector<8xf32>
    %78 = vector.shape_cast %77 : vector<8xf32> to vector<8x1xf32>
    %79 = tpu.reciprocal %78 {approx = true} : vector<8x1xf32> -> vector<8x1xf32>
    %80 = vector.broadcast %79 : vector<8x1xf32> to vector<8x16xf32>
    %81 = arith.mulf %76, %80 : vector<8x16xf32>
    %82 = arith.truncf %81 : vector<8x16xf32> to vector<8x16xbf16>
    %cst_34 = arith.constant dense<0.000000e+00> : vector<8x8xf32>
    %83 = tpu.matmul %82, %66, %cst_34 {dimension_numbers = #tpu.dot_dimension_numbers<[1], [0], [0], [1], [0, 0, 1, 1], [], []>} : vector<8x16xbf16>, vector<16x8xbf16>, vector<8x8xf32> -> vector<8x8xf32>
    %84 = arith.truncf %83 : vector<8x8xf32> to vector<8x8xbf16>
    %c16 = arith.constant 16 : index
    %c0_35 = arith.constant 0 : index
    %85 = vector.load %arg6[%c16, %c0_35] : memref<32x32xbf16, #tpu.memory_space<vmem>>, vector<8x32xbf16>
    %cst_36 = arith.constant dense<0.000000e+00> : vector<8x32xf32>
    %86 = tpu.matmul %84, %85, %cst_36 {dimension_numbers = #tpu.dot_dimension_numbers<[1], [0], [0], [1], [0, 0, 1, 1], [], []>} : vector<8x8xbf16>, vector<8x32xbf16>, vector<8x32xf32> -> vector<8x32xf32>
    %87 = arith.addf %63, %86 : vector<8x32xf32>
    %88 = vector.extract_strided_slice %6 {offsets = [0, 24], sizes = [8, 8], strides = [1, 1]} : vector<8x32xbf16> to vector<8x8xbf16>
    %89 = vector.extract_strided_slice %8 {offsets = [0, 24], sizes = [16, 8], strides = [1, 1]} : vector<16x32xbf16> to vector<16x8xbf16>
    %90 = vector.extract_strided_slice %10 {offsets = [0, 24], sizes = [16, 8], strides = [1, 1]} : vector<16x32xbf16> to vector<16x8xbf16>
    %cst_37 = arith.constant dense<0.000000e+00> : vector<8x16xf32>
    %91 = tpu.matmul %88, %89, %cst_37 {dimension_numbers = #tpu.dot_dimension_numbers<[1], [1], [0], [0], [0, 0, 1, 0], [], []>} : vector<8x8xbf16>, vector<16x8xbf16>, vector<8x16xf32> -> vector<8x16xf32>
    %cst_38 = arith.constant 0.353553385 : f32
    %92 = vector.broadcast %cst_38 : f32 to vector<8x16xf32>
    %93 = arith.mulf %91, %92 : vector<8x16xf32>
    %cst_39 = arith.constant -1.000000e+09 : f32
    %94 = vector.broadcast %cst_39 : f32 to vector<8x16xf32>
    %95 = arith.select %4, %93, %94 : vector<8x16xi1>, vector<8x16xf32>
    %cst_40 = arith.constant dense<0xFF800000> : vector<8xf32>
    %96 = vector.multi_reduction <maximumf>, %95, %cst_40 [1] : vector<8x16xf32> to vector<8xf32>
    %97 = vector.shape_cast %96 : vector<8xf32> to vector<8x1xf32>
    %98 = vector.broadcast %97 : vector<8x1xf32> to vector<8x16xf32>
    %99 = arith.subf %95, %98 : vector<8x16xf32>
    %100 = math.exp %99 : vector<8x16xf32>
    %cst_41 = arith.constant dense<0.000000e+00> : vector<8xf32>
    %101 = vector.multi_reduction <add>, %100, %cst_41 [1] : vector<8x16xf32> to vector<8xf32>
    %102 = vector.shape_cast %101 : vector<8xf32> to vector<8x1xf32>
    %103 = tpu.reciprocal %102 {approx = true} : vector<8x1xf32> -> vector<8x1xf32>
    %104 = vector.broadcast %103 : vector<8x1xf32> to vector<8x16xf32>
    %105 = arith.mulf %100, %104 : vector<8x16xf32>
    %106 = arith.truncf %105 : vector<8x16xf32> to vector<8x16xbf16>
    %cst_42 = arith.constant dense<0.000000e+00> : vector<8x8xf32>
    %107 = tpu.matmul %106, %90, %cst_42 {dimension_numbers = #tpu.dot_dimension_numbers<[1], [0], [0], [1], [0, 0, 1, 1], [], []>} : vector<8x16xbf16>, vector<16x8xbf16>, vector<8x8xf32> -> vector<8x8xf32>
    %108 = arith.truncf %107 : vector<8x8xf32> to vector<8x8xbf16>
    %c24 = arith.constant 24 : index
    %c0_43 = arith.constant 0 : index
    %109 = vector.load %arg6[%c24, %c0_43] : memref<32x32xbf16, #tpu.memory_space<vmem>>, vector<8x32xbf16>
    %cst_44 = arith.constant dense<0.000000e+00> : vector<8x32xf32>
    %110 = tpu.matmul %108, %109, %cst_44 {dimension_numbers = #tpu.dot_dimension_numbers<[1], [0], [0], [1], [0, 0, 1, 1], [], []>} : vector<8x8xbf16>, vector<8x32xbf16>, vector<8x32xf32> -> vector<8x32xf32>
    %111 = arith.addf %87, %110 : vector<8x32xf32>
    %c0_45 = arith.constant 0 : index
    %c0_46 = arith.constant 0 : index
    %c0_47 = arith.constant 0 : index
    %112 = vector.load %arg9[%c0_45, %c0_46, %c0_47] : memref<1x8x32xf32, #tpu.memory_space<vmem>>, vector<1x8x32xf32>
    %113 = vector.shape_cast %112 : vector<1x8x32xf32> to vector<8x32xf32>
    %114 = vector.shape_cast %111 : vector<8x32xf32> to vector<1x8x32xf32>
    tpu.vector_store %arg9[%c0_45, %c0_46, %c0_47], %114 {strides = array<i32>} : memref<1x8x32xf32, #tpu.memory_space<vmem>>, vector<1x8x32xf32>,
    return
  }
  func.func @transform_0(%arg0: i32, %arg1: i32, %arg2: memref<2xi32, #tpu.memory_space<smem>>) -> (i32, i32, i32) {
    %c0_i32 = arith.constant 0 : i32
    %c0_i32_0 = arith.constant 0 : i32
    return %arg0, %arg1, %c0_i32 : i32, i32, i32
  }
  func.func @transform_1(%arg0: i32, %arg1: i32, %arg2: memref<2xi32, #tpu.memory_space<smem>>) -> (i32, i32, i32) {
    %c0_i32 = arith.constant 0 : i32
    %c0_i32_0 = arith.constant 0 : i32
    %c0_i32_1 = arith.constant 0 : i32
    return %arg0, %c0_i32, %c0_i32_0 : i32, i32, i32
  }
  func.func @transform_2(%arg0: i32, %arg1: i32, %arg2: memref<2xi32, #tpu.memory_space<smem>>) -> (i32, i32, i32) {
    %c0_i32 = arith.constant 0 : i32
    %c0_i32_0 = arith.constant 0 : i32
    %c0_i32_1 = arith.constant 0 : i32
    return %arg0, %c0_i32, %c0_i32_0 : i32, i32, i32
  }
  func.func @transform_3(%arg0: i32, %arg1: i32, %arg2: memref<2xi32, #tpu.memory_space<smem>>) -> (i32, i32) {
    %c0_i32 = arith.constant 0 : i32
    %c0_i32_0 = arith.constant 0 : i32
    %c0_i32_1 = arith.constant 0 : i32
    return %c0_i32, %c0_i32_0 : i32, i32
  }
  func.func @transform_4(%arg0: i32, %arg1: i32, %arg2: memref<2xi32, #tpu.memory_space<smem>>) -> (i32, i32) {
    %c0_i32 = arith.constant 0 : i32
    %c0_i32_0 = arith.constant 0 : i32
    %c0_i32_1 = arith.constant 0 : i32
    return %c0_i32, %c0_i32_0 : i32, i32
  }
  func.func @transform_5(%arg0: i32, %arg1: i32, %arg2: memref<2xi32, #tpu.memory_space<smem>>) -> (i32, i32, i32) {
    %c0_i32 = arith.constant 0 : i32
    %c0_i32_0 = arith.constant 0 : i32
    return %arg0, %arg1, %c0_i32 : i32, i32, i32
  }
  func.func @transform_6(%arg0: i32, %arg1: i32, %arg2: memref<2xi32, #tpu.memory_space<smem>>) -> (i32, i32, i32) {
    %c0_i32 = arith.constant 0 : i32
    %c0_i32_0 = arith.constant 0 : i32
    return %arg0, %arg1, %c0_i32 : i32, i32, i32
  }
}

</mosaic_0001>

<bundles_post_ra>
// kernel: decoder_layer.8
= control target key start
LH: loop header
LB: loop body
LE: loop exit
PB: predicated region body
PF: predicated region fallthrough
CT: control target
= control target key end

     0   :  { %vm25_vm0 = vcmask 261120   ;;  %v199_v14 = vmov 0.0   ;;  %vm200_vm1 = vmmov 0   ;;  %vm159_vm6 = vcmask 257024   ;;  %s263_s0 = inlined_call_operand.vmem [shape: f32[16,32], index: 0, kind: input, shape index: {}]   ;;  %s264_s3 = inlined_call_operand.vmem [shape: bf16[32,32], index: 3, kind: input, shape index: {}]   ;;  %s265_s1 = inlined_call_operand.vmem [shape: f32[1,32], index: 1, kind: input, shape index: {}]   ;;  %s266_s2 = inlined_call_operand.vmem [shape: f32[1,32], index: 2, kind: input, shape index: {}]   ;;  %s267_s4 = inlined_call_operand.vmem [shape: f32[1,32], index: 4, kind: input, shape index: {}]   ;;  %s268_s5 = inlined_call_operand.vmem [shape: bf16[16,32], index: 5, kind: output, shape index: {}]  }
   0x1   :  { %v21_v0 = vld [vmem:[%s263_s0] sm:$0xff]  ;;  %v22_v1 = vld [vmem:[%s263_s0 + $0x8] sm:$0xff]  ;;  %179 = vmatprep.subr.bf16.mxu0 %v199_v14  ;;  %183 = vmatprep.mubr.msk.bf16.mxu0 %vm200_vm1, %v199_v14 }
   0x2   :  { %v26_v2 = vsel %vm25_vm0, %v21_v0, 0.0  ;;  %v29_v3 = vsel %vm25_vm0, %v22_v1, 0.0  ;;  %v189_v15 = vld [vmem:[%s264_s3] sm:$0xff]   ;;  %v190_v16 = vld [vmem:[%s264_s3 + $0x8] sm:$0xff]  }
   0x3   :  { %27 = vadd.xlane.f32.xlu0 %v26_v2  ;;  %180 = vmatpush3.bf16.msra.mxu0 %v189_v15  ;;  %v166_v35 = vld [vmem:[%s265_s1] ss:$0 sm:$0xff] }
   0x4   :  { %181 = vmatprep.subr.bf16.mxu0 %v199_v14  ;;  %v167_v39 = vld [vmem:[%s266_s2] ss:$0 sm:$0xff] }
   0x5   :  { %v168_v44 = vld [vmem:[%s267_s4] ss:$0 sm:$0xff] }
   0x7   :  { %30 = vadd.xlane.f32.xlu0 %v29_v3  ;;  %182 = vmatpush3.bf16.msra.mxu0 %v190_v16 }
  0x90   :  { %v28_v4 = vpop.xlane.xlu0 %27 }
  0x91   :  { %v33_v5 = vmul.f32 0.03125, %v28_v4 }
  0x93   :  { %v35_v6 = vsub.f32 %v21_v0, %v33_v5 }
  0x94   :  { %v31_v7 = vpop.xlane.xlu0 %30 }
  0x95   :  { %v34_v8 = vmul.f32 0.03125, %v31_v7  ;;  %v37_v9 = vmul.f32 %v35_v6, %v35_v6 }
  0x97   :  { %v36_v10 = vsub.f32 %v22_v1, %v34_v8  ;;  %v39_v11 = vsel %vm25_vm0, %v37_v9, 0.0 }
  0x98   :  { %40 = vadd.xlane.f32.xlu1 %v39_v11 }
  0x99   :  { %v38_v12 = vmul.f32 %v36_v10, %v36_v10 }
  0x9b   :  { %v42_v13 = vsel %vm25_vm0, %v38_v12, 0.0 }
  0x9c   :  { %43 = vadd.xlane.f32.xlu1 %v42_v13 }
 0x125   :  { %v41_v17 = vpop.xlane.xlu1 %40 }
 0x126   :  { %v45_v18 = vmul.f32 0.032258064, %v41_v17 }
 0x128   :  { %191 = vrsqrt.f32 %v45_v18  ;;  %vm49_vm2 = vcmp.eq.f32.partialorder %v45_v18, inf  ;;  %v52_v23 = vand.u32 2147483648, %v45_v18  ;;  %vm51_vm3 = vcmp.eq.f32.partialorder %v45_v18, 0.0 }
 0x129   :  { %v44_v19 = vpop.xlane.xlu1 %43 }
 0x12a   :  { %v46_v20 = vmul.f32 0.032258064, %v44_v19 }
 0x12c   :  { %193 = vrsqrt.f32 %v46_v20  ;;  %vm56_vm4 = vcmp.eq.f32.partialorder %v46_v20, inf  ;;  %v59_v29 = vand.u32 2147483648, %v46_v20  ;;  %vm58_vm5 = vcmp.eq.f32.partialorder %v46_v20, 0.0 }
 0x132   :  { %v192_v21 = vpop.eup %191 }
 0x133   :  { %v48_v22 = vmul.f32 %v192_v21, %v45_v18 }
 0x135   :  { %v50_v24 = vsel %vm49_vm2, %v45_v18, %v48_v22 }
 0x136   :  { %v194_v25 = vpop.eup %193  ;;  %v53_v26 = vsel %vm51_vm3, %v52_v23, %v50_v24 }
 0x137   :  { %v61_v27 = vadd.f32 1e-06, %v53_v26  ;;  %v55_v28 = vmul.f32 %v194_v25, %v46_v20 }
 0x139   :  { %195 = vrcp.f32 %v61_v27  ;;  %v57_v30 = vsel %vm56_vm4, %v46_v20, %v55_v28 }
 0x13a   :  { %v60_v31 = vsel %vm58_vm5, %v59_v29, %v57_v30 }
 0x13b   :  { %v62_v32 = vadd.f32 1e-06, %v60_v31 }
 0x13d   :  { %197 = vrcp.f32 %v62_v32 }
 0x143   :  { %v196_v33 = vpop.eup %195 }
 0x144   :  { %v65_v34 = vmul.f32 %v196_v33, %v35_v6 }
 0x146   :  { %v73_v38 = vmul.f32 %v166_v35, %v65_v34 }
 0x147   :  { %v198_v36 = vpop.eup %197 }
 0x148   :  { %v66_v37 = vmul.f32 %v198_v36, %v36_v10  ;;  %v81_v41 = vadd.f32 %v167_v39, %v73_v38 }
 0x14a   :  { %v74_v40 = vmul.f32 %v166_v35, %v66_v37 }
 0x14c   :  { %v82_v42 = vadd.f32 %v167_v39, %v74_v40 }
 0x14e   :  { %v83_v43 = vpack.c.bf16 %v82_v42, %v81_v41 }
 0x150   :  { %184 = vmatmul.mubr.msk.bf16.vlgmr.msra.gmra.mrb[0].mxu0 %vm25_vm0, %v83_v43 }
 0x223   :  { %v144_v45 = vpop.f32.mrb[0].mxu0 }
 0x224   :  { %v145_v46 = vadd.f32 %v168_v44, %v144_v45  ;;  %v185_v47 = vpop.f32.mrb[1].mxu0 }
 0x225   :  { %v147_v48 = vpop.f32.mrb[2].mxu0 }
 0x226   :  { %v174_v49 = vpack.c.bf16 %v145_v46, %v145_v46  ;;  %v148_v50 = vadd.f32 %v168_v44, %v147_v48  ;;  %v186_v51 = vpop.f32.mrb[3].mxu0 }
 0x228   :  { %160 = vst.msk [vmem:[%s268_s5] sm:$0xf] %vm159_vm6, %v174_v49  ;;  %v175_v52 = vpack.c.bf16 %v148_v50, %v148_v50 }
 0x22a   :  { %161 = vst.msk [vmem:[%s268_s5 + $0x4] sm:$0xf] %vm159_vm6, %v175_v52 }

// kernel: decoder_layer.6
= control target key start
LH: loop header
LB: loop body
LE: loop exit
PB: predicated region body
PF: predicated region fallthrough
CT: control target
= control target key end

     0   :  { %vm28_vm0 = vcmask 261120   ;;  %v228_v14 = vmov 0.0   ;;  %vm229_vm1 = vmmov 0   ;;  %vm162_vm6 = vcmask 257024   ;;  %s230_s13 = smov 64   ;;  %s231_s14 = smov 96   ;;  %s322_s0 = inlined_call_operand.vmem [shape: f32[16,32], index: 0, kind: input, shape index: {}]   ;;  %s323_s3 = inlined_call_operand.vmem [shape: bf16[32,96], index: 3, kind: input, shape index: {}]   ;;  %s324_s1 = inlined_call_operand.vmem [shape: f32[1,32], index: 1, kind: input, shape index: {}]   ;;  %s325_s2 = inlined_call_operand.vmem [shape: f32[1,32], index: 2, kind: input, shape index: {}]   ;;  %s326_s4 = inlined_call_operand.vmem [shape: f32[1,96], index: 4, kind: input, shape index: {}]   ;;  %s327_s5 = inlined_call_operand.vmem [shape: bf16[16,32], index: 5, kind: output, shape index: {0}]   ;;  %s328_s7 = inlined_call_operand.vmem [shape: bf16[16,32], index: 7, kind: output, shape index: {2}]   ;;  %s329_s6 = inlined_call_operand.vmem [shape: bf16[16,32], index: 6, kind: output, shape index: {1}]  }
   0x1   :  { %v24_v0 = vld [vmem:[%s322_s0] sm:$0xff]  ;;  %v25_v1 = vld [vmem:[%s322_s0 + $0x8] sm:$0xff]  ;;  %206 = vmatprep.subr.bf16.mxu0 %v228_v14  ;;  %210 = vmatprep.mubr.msk.bf16.mxu0 %vm229_vm1, %v228_v14 }
   0x2   :  { %v29_v2 = vsel %vm28_vm0, %v24_v0, 0.0  ;;  %v32_v3 = vsel %vm28_vm0, %v25_v1, 0.0  ;;  %v218_v15 = vld [vmem:[%s323_s3] sm:$0xff]   ;;  %v219_v16 = vld [vmem:[%s323_s3 + $0x8] sm:$0xff]  }
   0x3   :  { %30 = vadd.xlane.f32.xlu0 %v29_v2  ;;  %207 = vmatpush3.bf16.msra.mxu0 %v218_v15  ;;  %v193_v35 = vld [vmem:[%s324_s1] ss:$0 sm:$0xff] }
   0x4   :  { %208 = vmatprep.subr.bf16.mxu0 %v228_v14  ;;  %v194_v39 = vld [vmem:[%s325_s2] ss:$0 sm:$0xff] }
   0x5   :  { %v195_v44 = vld [vmem:[%s326_s4] ss:$0 sm:$0xff] }
   0x7   :  { %33 = vadd.xlane.f32.xlu0 %v32_v3  ;;  %209 = vmatpush3.bf16.msra.mxu0 %v219_v16 }
  0x90   :  { %v31_v4 = vpop.xlane.xlu0 %30 }
  0x91   :  { %v36_v5 = vmul.f32 0.03125, %v31_v4 }
  0x93   :  { %v38_v6 = vsub.f32 %v24_v0, %v36_v5 }
  0x94   :  { %v34_v7 = vpop.xlane.xlu0 %33 }
  0x95   :  { %v37_v8 = vmul.f32 0.03125, %v34_v7  ;;  %v40_v9 = vmul.f32 %v38_v6, %v38_v6 }
  0x97   :  { %v39_v10 = vsub.f32 %v25_v1, %v37_v8  ;;  %v42_v11 = vsel %vm28_vm0, %v40_v9, 0.0 }
  0x98   :  { %43 = vadd.xlane.f32.xlu1 %v42_v11 }
  0x99   :  { %v41_v12 = vmul.f32 %v39_v10, %v39_v10 }
  0x9b   :  { %v45_v13 = vsel %vm28_vm0, %v41_v12, 0.0 }
  0x9c   :  { %46 = vadd.xlane.f32.xlu1 %v45_v13 }
 0x125   :  { %v44_v17 = vpop.xlane.xlu1 %43 }
 0x126   :  { %v48_v18 = vmul.f32 0.032258064, %v44_v17 }
 0x128   :  { %220 = vrsqrt.f32 %v48_v18  ;;  %vm52_vm2 = vcmp.eq.f32.partialorder %v48_v18, inf  ;;  %v55_v23 = vand.u32 2147483648, %v48_v18  ;;  %vm54_vm3 = vcmp.eq.f32.partialorder %v48_v18, 0.0 }
 0x129   :  { %v47_v19 = vpop.xlane.xlu1 %46 }
 0x12a   :  { %v49_v20 = vmul.f32 0.032258064, %v47_v19 }
 0x12c   :  { %222 = vrsqrt.f32 %v49_v20  ;;  %vm59_vm4 = vcmp.eq.f32.partialorder %v49_v20, inf  ;;  %v62_v29 = vand.u32 2147483648, %v49_v20  ;;  %vm61_vm5 = vcmp.eq.f32.partialorder %v49_v20, 0.0 }
 0x132   :  { %v221_v21 = vpop.eup %220 }
 0x133   :  { %v51_v22 = vmul.f32 %v221_v21, %v48_v18 }
 0x135   :  { %v53_v24 = vsel %vm52_vm2, %v48_v18, %v51_v22 }
 0x136   :  { %v223_v25 = vpop.eup %222  ;;  %v56_v26 = vsel %vm54_vm3, %v55_v23, %v53_v24 }
 0x137   :  { %v64_v27 = vadd.f32 1e-06, %v56_v26  ;;  %v58_v28 = vmul.f32 %v223_v25, %v49_v20 }
 0x139   :  { %224 = vrcp.f32 %v64_v27  ;;  %v60_v30 = vsel %vm59_vm4, %v49_v20, %v58_v28 }
 0x13a   :  { %v63_v31 = vsel %vm61_vm5, %v62_v29, %v60_v30 }
 0x13b   :  { %v65_v32 = vadd.f32 1e-06, %v63_v31 }
 0x13d   :  { %226 = vrcp.f32 %v65_v32 }
 0x143   :  { %v225_v33 = vpop.eup %224 }
 0x144   :  { %v68_v34 = vmul.f32 %v225_v33, %v38_v6 }
 0x146   :  { %v76_v38 = vmul.f32 %v193_v35, %v68_v34 }
 0x147   :  { %v227_v36 = vpop.eup %226 }
 0x148   :  { %v69_v37 = vmul.f32 %v227_v36, %v39_v10  ;;  %v84_v41 = vadd.f32 %v194_v39, %v76_v38 }
 0x14a   :  { %v77_v40 = vmul.f32 %v193_v35, %v69_v37 }
 0x14c   :  { %v85_v42 = vadd.f32 %v194_v39, %v77_v40 }
 0x14e   :  { %v86_v43 = vpack.c.bf16 %v85_v42, %v84_v41 }
 0x150   :  { %211 = vmatmul.mubr.msk.bf16.vlgmr.msra.gmra.mrb[0].mxu0 %vm28_vm0, %v86_v43 }
 0x223   :  { %v147_v45 = vpop.f32.mrb[0].mxu0 }
 0x224   :  { %v148_v46 = vadd.f32 %v195_v44, %v147_v45  ;;  %v212_v47 = vpop.f32.mrb[1].mxu0 }
 0x225   :  { %v150_v48 = vpop.f32.mrb[2].mxu0 }
 0x226   :  { %v201_v49 = vpack.c.bf16 %v148_v46, %v148_v46  ;;  %v151_v50 = vadd.f32 %v195_v44, %v150_v48  ;;  %v213_v51 = vpop.f32.mrb[3].mxu0 }
 0x228   :  { %163 = vst.msk [vmem:[%s327_s5] sm:$0xf] %vm162_vm6, %v201_v49  ;;  %v202_v52 = vpack.c.bf16 %v151_v50, %v151_v50  ;;  %173 = vrot.lane.b32.xlu1 %v201_v49, %s230_s13  ;;  %165 = vrot.lane.b32.xlu0 %v201_v49, %s231_s14 }
 0x22a   :  { %164 = vst.msk [vmem:[%s327_s5 + $0x4] sm:$0xf] %vm162_vm6, %v202_v52 }
 0x22c   :  { %167 = vrot.lane.b32.xlu1 %v202_v52, %s231_s14 }
 0x230   :  { %175 = vrot.lane.b32.xlu1 %v202_v52, %s230_s13 }
 0x29a   :  { %v174_v53 = vpop.permute.xlu1 %173  ;;  %v166_v54 = vpop.permute.xlu0 %165 }
 0x29b   :  { %179 = vst.msk [vmem:[%s328_s7] sm:$0xf] %vm162_vm6, %v174_v53  ;;  %171 = vst.msk [vmem:[%s329_s6] sm:$0xf] %vm162_vm6, %v166_v54 }
 0x29e   :  { %v168_v55 = vpop.permute.xlu1 %167 }
 0x29f   :  { %172 = vst.msk [vmem:[%s329_s6 + $0x4] sm:$0xf] %vm162_vm6, %v168_v55 }
 0x2a2   :  { %v176_v56 = vpop.permute.xlu1 %175 }
 0x2a3   :  { %180 = vst.msk [vmem:[%s328_s7 + $0x4] sm:$0xf] %vm162_vm6, %v176_v56 }

// kernel: decoder_layer.9
= control target key start
LH: loop header
LB: loop body
LE: loop exit
PB: predicated region body
PF: predicated region fallthrough
CT: control target
= control target key end

     0   :  { %vm46_vm0 = vcmask 261120   ;;  %vm118_vm1 = vcmask 257024   ;;  %s175_s29 = smov 96   ;;  %s254_s1 = inlined_call_operand.vmem [shape: bf16[32,64], index: 1, kind: input, shape index: {}]   ;;  %s255_s0 = inlined_call_operand.vmem [shape: f32[32,32], index: 0, kind: input, shape index: {}]   ;;  %s256_s2 = inlined_call_operand.vmem [shape: f32[1,64], index: 2, kind: input, shape index: {}]   ;;  %s257_s3 = inlined_call_operand.vmem [shape: bf16[32,32], index: 3, kind: output, shape index: {0}]   ;;  %s258_s4 = inlined_call_operand.vmem [shape: bf16[32,32], index: 4, kind: output, shape index: {1}]  }
   0x1   :  { %v173_v0 = vld [vmem:[%s254_s1] sm:$0xff]   ;;  %v174_v1 = vld [vmem:[%s254_s1 + $0x8] sm:$0xff]   ;;  %v19_v5 = vld [vmem:[%s255_s0 + $0x10] sm:$0xff] }
   0x2   :  { %164 = vmatprep.subr.bf16.mxu0 %v173_v0  ;;  %v17_v2 = vld [vmem:[%s255_s0] sm:$0xff]  ;;  %v18_v3 = vld [vmem:[%s255_s0 + $0x8] sm:$0xff]  ;;  %v20_v6 = vld [vmem:[%s255_s0 + $0x18] sm:$0xff] }
   0x3   :  { %165 = vmatpush3.bf16.msra.mxu0 %v173_v0  ;;  %v21_v4 = vpack.c.bf16 %v18_v3, %v17_v2  ;;  %v22_v7 = vpack.c.bf16 %v20_v6, %v19_v5  ;;  %v147_v8 = vld [vmem:[%s256_s2] ss:$0 sm:$0xff] }
   0x4   :  { %166 = vmatprep.subr.bf16.mxu0 %v174_v1 }
   0x5   :  { %168 = vmatprep.mubr.msk.bf16.mxu0 %vm46_vm0, %v21_v4 }
   0x7   :  { %167 = vmatpush3.bf16.msra.mxu0 %v174_v1 }
   0xa   :  { %169 = vmatmul.mubr.msk.bf16.vlgmr.msra.gmra.mrb[0].mxu0 %vm46_vm0, %v22_v7 }
  0xdd   :  { %v170_v9 = vpop.f32.mrb[0].mxu0 }
  0xde   :  { %v96_v10 = vadd.f32 %v170_v9, %v147_v8  ;;  %v87_v11 = vpop.f32.mrb[1].mxu0 }
  0xdf   :  { %v88_v12 = vadd.f32 %v147_v8, %v87_v11  ;;  %v171_v13 = vpop.f32.mrb[2].mxu0 }
  0xe0   :  { %v158_v14 = vpack.c.bf16 %v96_v10, %v96_v10  ;;  %v99_v15 = vadd.f32 %v171_v13, %v147_v8  ;;  %v90_v16 = vpop.f32.mrb[3].mxu0 }
  0xe1   :  { %v156_v17 = vpack.c.bf16 %v88_v12, %v88_v12  ;;  %v91_v18 = vadd.f32 %v147_v8, %v90_v16 }
  0xe2   :  { %121 = vst.msk [vmem:[%s257_s3 + $0x8] sm:$0xf] %vm118_vm1, %v158_v14  ;;  %v159_v19 = vpack.c.bf16 %v99_v15, %v99_v15  ;;  %127 = vrot.lane.b32.xlu1 %v158_v14, %s175_s29 }
  0xe3   :  { %119 = vst.msk [vmem:[%s257_s3] sm:$0xf] %vm118_vm1, %v156_v17  ;;  %v157_v20 = vpack.c.bf16 %v91_v18, %v91_v18  ;;  %123 = vrot.lane.b32.xlu0 %v156_v17, %s175_s29 }
  0xe4   :  { %122 = vst.msk [vmem:[%s257_s3 + $0xc] sm:$0xf] %vm118_vm1, %v159_v19 }
  0xe5   :  { %120 = vst.msk [vmem:[%s257_s3 + $0x4] sm:$0xf] %vm118_vm1, %v157_v20 }
  0xe6   :  { %129 = vrot.lane.b32.xlu1 %v159_v19, %s175_s29 }
  0xe7   :  { %125 = vrot.lane.b32.xlu0 %v157_v20, %s175_s29 }
 0x154   :  { %v128_v21 = vpop.permute.xlu1 %127 }
 0x155   :  { %137 = vst.msk [vmem:[%s258_s4 + $0x8] sm:$0xf] %vm118_vm1, %v128_v21  ;;  %v124_v22 = vpop.permute.xlu0 %123 }
 0x156   :  { %135 = vst.msk [vmem:[%s258_s4] sm:$0xf] %vm118_vm1, %v124_v22 }
 0x158   :  { %v130_v23 = vpop.permute.xlu1 %129 }
 0x159   :  { %138 = vst.msk [vmem:[%s258_s4 + $0xc] sm:$0xf] %vm118_vm1, %v130_v23  ;;  %v126_v24 = vpop.permute.xlu0 %125 }
 0x15a   :  { %136 = vst.msk [vmem:[%s258_s4 + $0x4] sm:$0xf] %vm118_vm1, %v126_v24 }

// kernel: decoder_layer.7
= control target key start
LH: loop header
LB: loop body
LE: loop exit
PB: predicated region body
PF: predicated region fallthrough
CT: control target
= control target key end

     0   :  { %s1579_s0 = inlined_call_operand.vmem [shape: s32[2], index: 0, kind: input, shape index: {}]   ;;  %s1580_s1 = inlined_call_operand.vmem [shape: bf16[2,8,32], index: 1, kind: input, shape index: {}]   ;;  %s1581_s2 = inlined_call_operand.vmem [shape: bf16[2,8,32], index: 2, kind: input, shape index: {}]   ;;  %s1582_s3 = inlined_call_operand.vmem [shape: bf16[2,8,32], index: 3, kind: input, shape index: {}]   ;;  %s1583_s4 = inlined_call_operand.vmem [shape: bf16[32,32], index: 4, kind: input, shape index: {}]   ;;  %s1584_s5 = inlined_call_operand.vmem [shape: f32[1,32], index: 5, kind: input, shape index: {}]   ;;  %s1585_s6 = inlined_call_operand.vmem [shape: f32[2,8,32], index: 6, kind: input, shape index: {}]   ;;  %s1586_s7 = inlined_call_operand.vmem [shape: f32[2,8,32], index: 7, kind: output, shape index: {}]  }
   0x1   :  { %s12_s26 = sshll.u32 %s1579_s0, 4  ;;  %s13_s26 = int_to_ptr.vmem [resolvable:$true] %s12_s26 }
   0x2   :  { %s1322_s27 = scalar_lea.vmem %s13_s26, 16  ;;  %p1327_p1 = scmp.lt.s32.totalorder %s13_s26, %s13_s26 }
   0x3   :  { %p1323_p0 = scmp.ne.s32.totalorder %s13_s26, %s1322_s27  ;;  %p1328_p2 = scmp.lt.s32.totalorder %s1322_s27, %s1322_s27 }
   0x5   :  { %p1329_p3 = por %p1328_p2, %p1327_p1 }
   0x7   :  { %p1330_p4 = pnand %p1329_p3, %p1323_p0 }
   0x9   :  { %1333 = shalt.err (!%p1330_p4)  }
   0xa   :  { %s1360_s28 = smov [#allocation3]  }
   0xb   :  { %15 = dma.vmem_to_smem %s13_s26, 16, %s1360_s28, [#allocation2] }
   0xc   :  { %1346 = dma.done.wait [#allocation2], 16 }
   0xd   :  { %1347 = vsyncadd [#allocation2], 4294967280 }
   0xe   :  { %17 = sfence }
   0xf   :  { %s1409_s29 = smov 0   ;;  %s1411_s30 = smov 0  }
  0x10   :  { %s1413_s8 = smov 0  }
  0x11 LB: > { %s35_s0 = sadd.s32 1, %s1354_s30  ;;  %p1140_p5 = scmp.ge.s32.totalorder %s1358_s8, 1  ;;  %s1358_s8 = sphi %s1413_s8, %s23_s8   ;;  %s1354_s30 = sphi %s1411_s30, %s1590_s30   ;;  %s1350_s29 = sphi %s1409_s29, %s1589_s29  }
  0x12   : > { %p37_p6 = scmp.ge.s32.totalorder %s35_s0, 2  ;;  %p269_p7 = scmp.lt.s32.totalorder %s1358_s8, 3 }
  0x14   : > { %s1592_s0 = smov (%p37_p6, %s35_s0), 0  ;;  %p270_p8 = pnand %p1140_p5, %p269_p7 }
  0x15   : > { %p318_p9 = scmp.lt.s32.totalorder (!%p270_p8), %s1350_s29, 1  ;;  %v1361_v0 = vmov (!%p270_p8), 0.0   ;;  %vm1362_vm0 = vmmov (!%p270_p8), 0   ;;  %vm372_vm1 = vcmask (!%p270_p8), 64512   ;;  %s348_s17 = sld [smem:[#allocation3 + %s1350_s29]] (!%p270_p8)  ;;  %v349_v4 = vlaneseq (!%p270_p8) }
  0x16   : > { %273 = sbr.rel (%p270_p8) target bundleno = 2088 (0x828), region = 44  ;;  %1188 = vmatprep.subr.bf16.mxu0 (!%p270_p8), %v1361_v0  ;;  %1190 = vmatprep.mubr.msk.bf16.mxu0 (!%p270_p8), %vm1362_vm0, %v1361_v0  ;;  %s1363_s18 = smov (!%p270_p8), 120   ;;  %vm436_vm5 = vcmask (!%p270_p8), 1043456   ;;  %v481_v35 = vld [vmem:[%s1583_s4] sm:$0xf] (!%p270_p8)  ;;  %vm1021_vm6 = vcmask (!%p270_p8), 261120  }
  0x17   : > { %1200 = vmatprep.subr.bf16.mxu1 (!%p270_p8), %v1361_v0  ;;  %1202 = vmatprep.mubr.msk.bf16.mxu1 (!%p270_p8), %vm1362_vm0, %v1361_v0  ;;  %v350_v5 = vand.u32 (!%p270_p8), 127, %v349_v4  ;;  %v355_v6 = vshrl.u32 (!%p270_p8), %v349_v4, 7  ;;  %s1364_s19 = smov (!%p270_p8), 112   ;;  %v486_v36 = vsel (!%p270_p8), %vm436_vm5, %v481_v35, 0  ;;  %s1365_s25 = smov (!%p270_p8), 104  }
  0x18   : > { %1201 = vmatpush3.bf16.msra.mxu1 (!%p270_p8), %v486_v36 }
  0x19   : > { %vm358_vm3 = vcmp.le.s32.totalorder (!%p270_p8), %v350_v5, %v355_v6  ;;  %1212 = vmatprep.subr.bf16.mxu1 (!%p270_p8), %v1361_v0 }
  0x1b   : > { %v351_v7 = vstv (!%p270_p8), %s348_s17 }
  0x1c   : > { %vm352_vm2 = vcmp.lt.s32.totalorder (!%p270_p8), %v350_v5, %v351_v7 }
  0x1d   : > { %s1430_s9 = scalar_select %p318_p9, %s1350_s29, 1  ;;  %vm1451_vm4 = vmand %vm352_vm2, %vm358_vm3 }
  0x1f   : > { %s1436_s10 = sshll.u32 %s1430_s9, 2  ;;  %s1144_s12 = sshll.u32 %s1430_s9, 3 }
  0x20   : > { %s328_s13 = scalar_lea.vmem %s1581_s2, %s1436_s10  ;;  %s324_s16 = scalar_lea.vmem %s1580_s1, %s1436_s10 }
  0x21   : > { %v361_v1 = vld [vmem:[%s328_s13] sm:$0xf]  ;;  %s332_s22 = scalar_lea.vmem %s1582_s3, %s1436_s10  ;;  %s339_s15 = scalar_lea.vmem %s1585_s6, %s1144_s12 }
  0x22   : > { %v377_v2 = vsel %vm372_vm1, %v361_v1, 0  ;;  %v360_v3 = vld [vmem:[%s324_s16] sm:$0xf]  ;;  %v1458_v16 = vcombine.low %v361_v1, %v361_v1  ;;  %s346_s20 = scalar_lea.vmem %s1586_s7, %s1144_s12 }
  0x23   : > { %1189 = vmatpush3.bf16.xpose.msra.mxu0 %v377_v2  ;;  %v1462_v17 = vcombine.low %v360_v3, %v360_v3  ;;  %v362_v23 = vld [vmem:[%s332_s22] sm:$0xf] }
  0x24   : > { %1194 = vmatprep.subr.bf16.mxu0 %v1361_v0  ;;  %537 = vrot.lane.b32.xlu1 %v1458_v16, %s1363_s18  ;;  %v438_v24 = vsel %vm436_vm5, %v362_v23, 0  ;;  %v1501_v53 = vcombine.low %v362_v23, %v362_v23 }
  0x28   : > { %532 = vrot.lane.b32.xlu1 %v1462_v17, %s1363_s18 }
  0x2a   : > { %1191 = vmatmul.mubr.msk.bf16.vlgmr.msra.gmra.mrb[0].mxu0 %vm372_vm1, %v360_v3 }
  0x2b   : > { %1196 = vmatprep.mubr.msk.bf16.mxu0 %vm1362_vm0, %v1361_v0  ;;  %1195 = vmatpush3.bf16.msra.mxu0 %v438_v24 }
  0x2c   : > { %699 = vrot.lane.b32.xlu1 %v1462_v17, %s1364_s19  ;;  %1206 = vmatprep.subr.bf16.mxu0 %v1361_v0 }
  0x96   : > { %v538_v27 = vpop.permute.xlu1 %537 }
  0x97   : > { %v543_v29 = vsel %vm372_vm1, %v538_v27, 0 }
  0x9a   : > { %v533_v32 = vpop.permute.xlu1 %532 }
  0x9e   : > { %v700_v34 = vpop.permute.xlu1 %699 }
  0xfd   : > { %v413_v8 = vpop.f32.mrb[0].mxu0 }
  0xfe   : > { %v419_v10 = vmul.f32 0.35355338, %v413_v8  ;;  %v1192_v11 = vpop.f32.mrb[1].mxu0 }
  0xff   : > { %v416_v12 = vpop.f32.mrb[2].mxu0 }
 0x100   : > { %v1193_v13 = vpop.f32.mrb[3].mxu0  ;;  %v420_v14 = vsel %vm1451_vm4, %v419_v10, -1e+09 }
 0x101   : > { %v421_v15 = vsel %vm372_vm1, %v420_v14, -inf }
 0x102   : > { %422 = vmax.xlane.f32.xlu0 %v421_v15 }
 0x18f   : > { %v423_v18 = vpop.xlane.xlu0 %422 }
 0x190   : > { %v424_v19 = vsub.f32 %v420_v14, %v423_v18 }
 0x192   : > { %v425_v20 = vmul.f32 1.442695, %v424_v19 }
 0x194   : > { %1306 = vpow2.f32 %v425_v20  ;;  %v651_v20 = vld [vmem:[%s1583_s4 + $0x4] sm:$0xf] }
 0x19e   : > { %v1307_v21 = vpop.eup %1306 }
 0x19f   : > { %v427_v22 = vsel %vm372_vm1, %v1307_v21, 0.0 }
 0x1a0   : > { %428 = vadd.xlane.f32.xlu0 %v427_v22 }
 0x1b6   : > { %701 = vrot.lane.b32.xlu0 %v1458_v16, %s1364_s19 }
 0x22d   : > { %v429_v25 = vpop.xlane.xlu0 %428 }
 0x22e   : > { %1308 = vrcp.f32 %v429_v25 }
 0x231   : > { %v702_v31 = vpop.permute.xlu0 %701 }
 0x232   : > { %v707_v33 = vsel %vm372_vm1, %v702_v31, 0 }
 0x238   : > { %v1309_v26 = vpop.eup %1308 }
 0x239   : > { %v431_v28 = vmul.f32 %v1309_v26, %v1307_v21  ;;  %v656_v21 = vsel %vm436_vm5, %v651_v20, 0 }
 0x23b   : > { %v432_v30 = vpack.c.bf16 %v431_v28, %v431_v28 }
 0x23d   : > { %1197 = vmatmul.mubr.msk.bf16.vlgmr.msra.gmra.mrb[4].mxu0 %vm372_vm1, %v432_v30 }
 0x23e   : > { %1207 = vmatpush3.bf16.xpose.msra.mxu0 %v543_v29  ;;  %1208 = vmatprep.mubr.msk.bf16.mxu0 %vm1362_vm0, %v1361_v0 }
 0x23f   : > { %1224 = vmatprep.subr.bf16.mxu0 %v1361_v0 }
 0x245   : > { %1209 = vmatmul.mubr.msk.bf16.vlgmr.msra.gmra.mrb[8].mxu0 %vm372_vm1, %v533_v32 }
 0x246   : > { %1225 = vmatpush3.bf16.xpose.msra.mxu0 %v707_v33  ;;  %1226 = vmatprep.mubr.msk.bf16.mxu0 %vm1362_vm0, %v1361_v0  ;;  %v812_v33 = vld [vmem:[%s1583_s4 + $0x8] sm:$0xf] }
 0x247   : > { %1230 = vmatprep.subr.bf16.mxu0 %v1361_v0 }
 0x24d   : > { %1227 = vmatmul.mubr.msk.bf16.vlgmr.msra.gmra.mrb[12].mxu0 %vm372_vm1, %v700_v34 }
 0x24e   : > { %1232 = vmatprep.mubr.msk.bf16.mxu0 %vm1362_vm0, %v1361_v0 }
 0x310   : > { %v474_v37 = vpop.f32.mrb[4].mxu0 }
 0x311   : > { %v480_v38 = vpack.c.bf16 %v474_v37, %v474_v37  ;;  %v1198_v39 = vpop.f32.mrb[5].mxu0  ;;  %v817_v37 = vsel %vm436_vm5, %v812_v33, 0 }
 0x312   : > { %v477_v40 = vpop.f32.mrb[6].mxu0 }
 0x313   : > { %v1199_v41 = vpop.f32.mrb[7].mxu0  ;;  %1203 = vmatmul.mubr.msk.bf16.vlgmr.msra.gmra.mrb[0].mxu1 %vm372_vm1, %v480_v38 }
 0x314   : > { %1214 = vmatprep.mubr.msk.bf16.mxu1 %vm1362_vm0, %v1361_v0 }
 0x318   : > { %v579_v42 = vpop.f32.mrb[8].mxu0 }
 0x319   : > { %v1210_v43 = vpop.f32.mrb[9].mxu0  ;;  %v585_v54 = vmul.f32 0.35355338, %v579_v42 }
 0x31a   : > { %v582_v44 = vpop.f32.mrb[10].mxu0 }
 0x31b   : > { %v1211_v45 = vpop.f32.mrb[11].mxu0  ;;  %v586_v55 = vsel %vm1451_vm4, %v585_v54, -1e+09 }
 0x31c   : > { %v587_v56 = vsel %vm372_vm1, %v586_v55, -inf }
 0x320   : > { %v743_v46 = vpop.f32.mrb[12].mxu0 }
 0x321   : > { %v749_v47 = vmul.f32 0.35355338, %v743_v46  ;;  %v1228_v48 = vpop.f32.mrb[13].mxu0 }
 0x322   : > { %v746_v49 = vpop.f32.mrb[14].mxu0 }
 0x323   : > { %v1229_v50 = vpop.f32.mrb[15].mxu0  ;;  %v750_v51 = vsel %vm1451_vm4, %v749_v47, -1e+09  ;;  %v973_v49 = vld [vmem:[%s1583_s4 + $0xc] sm:$0xf] }
 0x324   : > { %v751_v52 = vsel %vm372_vm1, %v750_v51, -inf }
 0x325   : > { %752 = vmax.xlane.f32.xlu1 %v751_v52  ;;  %v978_v52 = vsel %vm436_vm5, %v973_v49, 0 }
 0x336   : > { %763 = vrot.lane.b32.xlu1 %v1501_v53, %s1364_s19 }
 0x33a   : > { %860 = vrot.lane.b32.xlu1 %v1462_v17, %s1365_s25 }
 0x35e   : > { %588 = vmax.xlane.f32.xlu1 %v587_v56 }
 0x36f   : > { %602 = vrot.lane.b32.xlu1 %v1501_v53, %s1363_s18 }
 0x3b2   : > { %v753_v57 = vpop.xlane.xlu1 %752 }
 0x3b3   : > { %v754_v58 = vsub.f32 %v750_v51, %v753_v57 }
 0x3b5   : > { %v755_v59 = vmul.f32 1.442695, %v754_v58  ;;  %v363_v58 = vld [vmem:[%s339_s15] sm:$0xff] }
 0x3b6   : > { %v764_v60 = vpop.permute.xlu1 %763 }
 0x3b7   : > { %1310 = vpow2.f32 %v755_v59  ;;  %v769_v61 = vsel %vm436_vm5, %v764_v60, 0  ;;  %v1146_v59 = vld [vmem:[%s1584_s5] ss:$0 sm:$0xff] }
 0x3b8   : > { %1231 = vmatpush3.bf16.msra.mxu0 %v769_v61  ;;  %v371_v60 = vadd.f32 %v1146_v59, %v363_v58 }
 0x3b9   : > { %1242 = vmatprep.subr.bf16.mxu0 %v1361_v0 }
 0x3ba   : > { %v861_v1 = vpop.permute.xlu1 %860 }
 0x3c1   : > { %v1311_v62 = vpop.eup %1310 }
 0x3c2   : > { %v757_v63 = vsel %vm372_vm1, %v1311_v62, 0.0 }
 0x3c3   : > { %758 = vadd.xlane.f32.xlu0 %v757_v63 }
 0x3d9   : > { %862 = vrot.lane.b32.xlu0 %v1458_v16, %s1365_s25 }
 0x3eb   : > { %v589_v2 = vpop.xlane.xlu1 %588 }
 0x3ec   : > { %v590_v3 = vsub.f32 %v586_v55, %v589_v2 }
 0x3ee   : > { %v591_v4 = vmul.f32 1.442695, %v590_v3 }
 0x3ef   : > { %v603_v7 = vpop.permute.xlu1 %602 }
 0x3f0   : > { %1312 = vpow2.f32 %v591_v4  ;;  %v608_v8 = vsel %vm436_vm5, %v603_v7, 0 }
 0x3f1   : > { %1213 = vmatpush3.bf16.msra.mxu1 %v608_v8 }
 0x3f2   : > { %1218 = vmatprep.subr.bf16.mxu1 %v1361_v0 }
 0x3fa   : > { %v1313_v5 = vpop.eup %1312 }
 0x3fb   : > { %v593_v6 = vsel %vm372_vm1, %v1313_v5, 0.0 }
 0x3fc   : > { %594 = vadd.xlane.f32.xlu0 %v593_v6 }
 0x450   : > { %v759_v10 = vpop.xlane.xlu0 %758 }
 0x451   : > { %1314 = vrcp.f32 %v759_v10 }
 0x454   : > { %v863_v12 = vpop.permute.xlu0 %862 }
 0x455   : > { %v868_v14 = vsel %vm372_vm1, %v863_v12, 0 }
 0x45b   : > { %v1315_v11 = vpop.eup %1314 }
 0x45c   : > { %v761_v13 = vmul.f32 %v1315_v11, %v1311_v62 }
 0x45e   : > { %v762_v15 = vpack.c.bf16 %v761_v13, %v761_v13 }
 0x460   : > { %1233 = vmatmul.mubr.msk.bf16.vlgmr.msra.gmra.mrb[16].mxu0 %vm372_vm1, %v762_v15 }
 0x461   : > { %1243 = vmatpush3.bf16.xpose.msra.mxu0 %v868_v14  ;;  %1244 = vmatprep.mubr.msk.bf16.mxu0 %vm1362_vm0, %v1361_v0 }
 0x468   : > { %1245 = vmatmul.mubr.msk.bf16.vlgmr.msra.gmra.mrb[20].mxu0 %vm372_vm1, %v861_v1 }
 0x489   : > { %v595_v16 = vpop.xlane.xlu0 %594 }
 0x48a   : > { %1316 = vrcp.f32 %v595_v16 }
 0x494   : > { %v1317_v17 = vpop.eup %1316 }
 0x495   : > { %v597_v18 = vmul.f32 %v1317_v17, %v1313_v5 }
 0x497   : > { %v598_v19 = vpack.c.bf16 %v597_v18, %v597_v18 }
 0x499   : > { %1215 = vmatmul.mubr.msk.bf16.vlgmr.msra.gmra.mrb[4].mxu1 %vm372_vm1, %v598_v19 }
 0x49a   : > { %1220 = vmatprep.mubr.msk.bf16.mxu1 %vm1362_vm0, %v1361_v0  ;;  %1219 = vmatpush3.bf16.msra.mxu1 %v656_v21 }
 0x49b   : > { %1236 = vmatprep.subr.bf16.mxu1 %v1361_v0 }
 0x533   : > { %v805_v22 = vpop.f32.mrb[16].mxu0 }
 0x534   : > { %v1234_v23 = vpop.f32.mrb[17].mxu0  ;;  %v811_v9 = vpack.c.bf16 %v805_v22, %v805_v22 }
 0x535   : > { %v808_v24 = vpop.f32.mrb[18].mxu0 }
 0x536   : > { %v1235_v25 = vpop.f32.mrb[19].mxu0 }
 0x53b   : > { %v904_v26 = vpop.f32.mrb[20].mxu0 }
 0x53c   : > { %v910_v27 = vmul.f32 0.35355338, %v904_v26  ;;  %v1246_v28 = vpop.f32.mrb[21].mxu0 }
 0x53d   : > { %v907_v29 = vpop.f32.mrb[22].mxu0 }
 0x53e   : > { %v1247_v30 = vpop.f32.mrb[23].mxu0  ;;  %v911_v31 = vsel %vm1451_vm4, %v910_v27, -1e+09 }
 0x53f   : > { %v912_v32 = vsel %vm372_vm1, %v911_v31, -inf }
 0x540   : > { %913 = vmax.xlane.f32.xlu0 %v912_v32 }
 0x56c   : > { %v644_v34 = vpop.f32.mrb[4].mxu1 }
 0x56d   : > { %v650_v35 = vpack.c.bf16 %v644_v34, %v644_v34  ;;  %v1216_v36 = vpop.f32.mrb[5].mxu1 }
 0x56e   : > { %v647_v38 = vpop.f32.mrb[6].mxu1 }
 0x56f   : > { %v1217_v39 = vpop.f32.mrb[7].mxu1  ;;  %1221 = vmatmul.mubr.msk.bf16.vlgmr.msra.gmra.mrb[0].mxu1 %vm372_vm1, %v650_v35 }
 0x570   : > { %1237 = vmatpush3.bf16.msra.mxu1 %v817_v37  ;;  %1238 = vmatprep.mubr.msk.bf16.mxu1 %vm1362_vm0, %v1361_v0 }
 0x571   : > { %1248 = vmatprep.subr.bf16.mxu1 %v1361_v0 }
 0x57b   : > { %1239 = vmatmul.mubr.msk.bf16.vlgmr.msra.gmra.mrb[0].mxu1 %vm372_vm1, %v811_v9 }
 0x57c   : > { %1250 = vmatprep.mubr.msk.bf16.mxu1 %vm1362_vm0, %v1361_v0 }
 0x5cd   : > { %v914_v40 = vpop.xlane.xlu0 %913 }
 0x5ce   : > { %v915_v41 = vsub.f32 %v911_v31, %v914_v40 }
 0x5d0   : > { %v916_v42 = vmul.f32 1.442695, %v915_v41 }
 0x5d2   : > { %1318 = vpow2.f32 %v916_v42 }
 0x5dc   : > { %v1319_v43 = vpop.eup %1318 }
 0x5dd   : > { %v918_v44 = vsel %vm372_vm1, %v1319_v43, 0.0 }
 0x5de   : > { %919 = vadd.xlane.f32.xlu0 %v918_v44 }
 0x5f4   : > { %924 = vrot.lane.b32.xlu0 %v1501_v53, %s1365_s25 }
 0x66b   : > { %v920_v45 = vpop.xlane.xlu0 %919 }
 0x66c   : > { %1320 = vrcp.f32 %v920_v45 }
 0x66f   : > { %v925_v46 = vpop.permute.xlu0 %924 }
 0x670   : > { %v930_v47 = vsel %vm436_vm5, %v925_v46, 0 }
 0x671   : > { %1249 = vmatpush3.bf16.msra.mxu1 %v930_v47 }
 0x672   : > { %1254 = vmatprep.subr.bf16.mxu1 %v1361_v0 }
 0x676   : > { %v1321_v48 = vpop.eup %1320 }
 0x677   : > { %v922_v50 = vmul.f32 %v1321_v48, %v1319_v43 }
 0x679   : > { %v923_v51 = vpack.c.bf16 %v922_v50, %v922_v50 }
 0x67b   : > { %1251 = vmatmul.mubr.msk.bf16.vlgmr.msra.gmra.mrb[8].mxu1 %vm372_vm1, %v923_v51 }
 0x67c   : > { %1255 = vmatpush3.bf16.msra.mxu1 %v978_v52  ;;  %1256 = vmatprep.mubr.msk.bf16.mxu1 %vm1362_vm0, %v1361_v0 }
 0x74e   : > { %v966_v53 = vpop.f32.mrb[8].mxu1 }
 0x74f   : > { %v972_v54 = vpack.c.bf16 %v966_v53, %v966_v53  ;;  %v1252_v55 = vpop.f32.mrb[9].mxu1 }
 0x750   : > { %v969_v56 = vpop.f32.mrb[10].mxu1 }
 0x751   : > { %v1253_v57 = vpop.f32.mrb[11].mxu1  ;;  %1257 = vmatmul.mubr.msk.bf16.vlgmr.msra.gmra.mrb[0].mxu1 %vm372_vm1, %v972_v54 }
 0x824   : > { %v1014_v0 = vpop.f32.mrb[0].mxu1 }
 0x825   : > { %v1260_v61 = vadd.f32 %v1014_v0, %v371_v60  ;;  %v1258_v62 = vpop.f32.mrb[1].mxu1 }
 0x826   : > { %v1017_v63 = vpop.f32.mrb[2].mxu1 }
 0x827   : > { %1022 = vst.msk [vmem:[%s346_s20] sm:$0xff] %vm1021_vm6, %v1260_v61  ;;  %v1259_v1 = vpop.f32.mrb[3].mxu1 }
 0x828 PF: > { %s23_s8 = sadd.s32 1, %s1358_s8   ;;  %s1589_s29 = smov %s1354_s30 }
 0x829   : > { %p20_p10 = scmp.ge.s32.totalorder %s23_s8, 4   ;;  %s1590_s30 = smov %s1592_s0 }
 0x82b   :  { %22 = sbr.rel (!%p20_p10) target bundleno = 17 (0x11), region = 83 }

// kernel: decoder_layer.11
= control target key start
LH: loop header
LB: loop body
LE: loop exit
PB: predicated region body
PF: predicated region fallthrough
CT: control target
= control target key end

     0   :  { %vm36_vm0 = vcmask 261120   ;;  %s473_s0 = inlined_call_operand.vmem [shape: f32[16,32], index: 0, kind: input, shape index: {}]   ;;  %s474_s1 = inlined_call_operand.vmem [shape: f32[1,32], index: 1, kind: input, shape index: {}]   ;;  %s475_s2 = inlined_call_operand.vmem [shape: f32[1,32], index: 2, kind: input, shape index: {}]   ;;  %s476_s3 = inlined_call_operand.vmem [shape: bf16[32,64], index: 3, kind: input, shape index: {}]   ;;  %s477_s4 = inlined_call_operand.vmem [shape: f32[1,64], index: 4, kind: input, shape index: {}]   ;;  %s478_s5 = inlined_call_operand.vmem [shape: bf16[64,32], index: 5, kind: input, shape index: {}]   ;;  %s479_s6 = inlined_call_operand.vmem [shape: f32[1,32], index: 6, kind: input, shape index: {}]   ;;  %s480_s7 = inlined_call_operand.hbm [shape: f32[16,32], index: 7, kind: output, shape index: {}]  }
   0x1   :  { %v32_v0 = vld [vmem:[%s473_s0] sm:$0xff]  ;;  %v33_v2 = vld [vmem:[%s473_s0 + $0x8] sm:$0xff] }
   0x2   :  { %v287_v1 = vld [vmem:[%s479_s6] ss:$0 sm:$0xff]  ;;  %v37_v3 = vsel %vm36_vm0, %v32_v0, 0.0  ;;  %v40_v5 = vsel %vm36_vm0, %v33_v2, 0.0 }
   0x3   :  { %v103_v4 = vadd.f32 %v287_v1, %v32_v0  ;;  %v104_v6 = vadd.f32 %v287_v1, %v33_v2  ;;  %38 = vadd.xlane.f32.xlu0 %v37_v3 }
   0x5   :  { %105 = vst.msk [vmem:[#allocation3] sm:$0xff] %vm36_vm0, %v103_v4  ;;  %106 = vst.msk [vmem:[#allocation3 + $0x8] sm:$0xff] %vm36_vm0, %v104_v6 }
   0x6   :  { %12 = vsyncpa [#allocation5], 0  ;;  %v330_v17 = vld [vmem:[%s476_s3] sm:$0xff]   ;;  %v368_v18 = vmov 0.0   ;;  %vm369_vm1 = vmmov 0   ;;  %v331_v19 = vld [vmem:[%s476_s3 + $0x8] sm:$0xff]  }
   0x7   :  { %41 = vadd.xlane.f32.xlu0 %v40_v5  ;;  %305 = vmatprep.subr.bf16.mxu0 %v368_v18  ;;  %v332_v20 = vld [vmem:[%s478_s5] sm:$0xff]   ;;  %v333_v21 = vld [vmem:[%s478_s5 + $0x8] sm:$0xff]   ;;  %v334_v50 = vld [vmem:[%s478_s5 + $0x10] sm:$0xff]   ;;  %vm213_vm6 = vcmask 523264  }
   0x8   :  { %309 = vmatprep.mubr.msk.bf16.mxu0 %vm369_vm1, %v368_v18  ;;  %306 = vmatpush3.bf16.msra.mxu0 %v330_v17  ;;  %v285_v40 = vld [vmem:[%s474_s1] ss:$0 sm:$0xff]  ;;  %v335_v51 = vld [vmem:[%s478_s5 + $0x18] sm:$0xff]  }
   0x9   :  { %313 = vmatprep.subr.bf16.mxu1 %v368_v18  ;;  %307 = vmatprep.subr.bf16.mxu0 %v368_v18  ;;  %v286_v44 = vld [vmem:[%s475_s2] ss:$0 sm:$0xff] }
   0xa   :  { %321 = vmatprep.mubr.msk.bf16.mxu1 %vm369_vm1, %v368_v18  ;;  %314 = vmatpush3.bf16.msra.mxu1 %v332_v20  ;;  %v288_v52 = vld [vmem:[%s477_s4] ss:$0 sm:$0xff]  ;;  %s370_s4 = smov [#allocation4]  }
   0xb   :  { %315 = vmatprep.subr.bf16.mxu1 %v368_v18  ;;  %s274_s5 = sshll.u32 %s370_s4, 4  ;;  %s275_s5 = int_to_ptr.vmem [resolvable:$true] %s274_s5 }
   0xc   :  { %308 = vmatpush3.bf16.msra.mxu0 %v331_v19  ;;  %v178_v62 = vld [vmem:[#allocation3] sm:$0xff]  ;;  %s344_s20 = scalar_lea.vmem %s275_s5, 256  ;;  %p349_p1 = scmp.lt.s32.totalorder %s275_s5, %s275_s5 }
   0xd   :  { %p345_p0 = scmp.ne.s32.totalorder %s275_s5, %s344_s20  ;;  %p350_p2 = scmp.lt.s32.totalorder %s344_s20, %s344_s20 }
   0xe   :  { %316 = vmatpush3.bf16.msra.mxu1 %v333_v21 }
   0xf   :  { %317 = vmatprep.subr.bf16.mxu1 %v368_v18  ;;  %p351_p3 = por %p350_p2, %p349_p1 }
  0x11   :  { %p352_p4 = pnand %p351_p3, %p345_p0 }
  0x12   :  { %318 = vmatpush3.bf16.msra.mxu1 %v334_v50 }
  0x13   :  { %319 = vmatprep.subr.bf16.mxu1 %v368_v18 }
  0x16   :  { %320 = vmatpush3.bf16.msra.mxu1 %v335_v51 }
  0x90   :  { %v39_v7 = vpop.xlane.xlu0 %38 }
  0x91   :  { %v44_v8 = vmul.f32 0.03125, %v39_v7 }
  0x93   :  { %v46_v9 = vsub.f32 %v32_v0, %v44_v8  ;;  %v179_v0 = vld [vmem:[#allocation3 + $0x8] sm:$0xff] }
  0x94   :  { %v42_v10 = vpop.xlane.xlu0 %41 }
  0x95   :  { %v45_v11 = vmul.f32 0.03125, %v42_v10  ;;  %v48_v12 = vmul.f32 %v46_v9, %v46_v9 }
  0x97   :  { %v47_v13 = vsub.f32 %v33_v2, %v45_v11  ;;  %v50_v14 = vsel %vm36_vm0, %v48_v12, 0.0 }
  0x98   :  { %51 = vadd.xlane.f32.xlu1 %v50_v14 }
  0x99   :  { %v49_v15 = vmul.f32 %v47_v13, %v47_v13 }
  0x9b   :  { %v53_v16 = vsel %vm36_vm0, %v49_v15, 0.0 }
  0x9c   :  { %54 = vadd.xlane.f32.xlu1 %v53_v16 }
 0x125   :  { %v52_v22 = vpop.xlane.xlu1 %51 }
 0x126   :  { %v56_v23 = vmul.f32 0.032258064, %v52_v22 }
 0x128   :  { %336 = vrsqrt.f32 %v56_v23  ;;  %vm60_vm2 = vcmp.eq.f32.partialorder %v56_v23, inf  ;;  %v63_v28 = vand.u32 2147483648, %v56_v23  ;;  %vm62_vm3 = vcmp.eq.f32.partialorder %v56_v23, 0.0 }
 0x129   :  { %v55_v24 = vpop.xlane.xlu1 %54 }
 0x12a   :  { %v57_v25 = vmul.f32 0.032258064, %v55_v24 }
 0x12c   :  { %338 = vrsqrt.f32 %v57_v25  ;;  %vm67_vm4 = vcmp.eq.f32.partialorder %v57_v25, inf  ;;  %v70_v34 = vand.u32 2147483648, %v57_v25  ;;  %vm69_vm5 = vcmp.eq.f32.partialorder %v57_v25, 0.0 }
 0x132   :  { %v337_v26 = vpop.eup %336 }
 0x133   :  { %v59_v27 = vmul.f32 %v337_v26, %v56_v23 }
 0x135   :  { %v61_v29 = vsel %vm60_vm2, %v56_v23, %v59_v27 }
 0x136   :  { %v339_v30 = vpop.eup %338  ;;  %v64_v31 = vsel %vm62_vm3, %v63_v28, %v61_v29 }
 0x137   :  { %v72_v32 = vadd.f32 1e-06, %v64_v31  ;;  %v66_v33 = vmul.f32 %v339_v30, %v57_v25 }
 0x139   :  { %340 = vrcp.f32 %v72_v32  ;;  %v68_v35 = vsel %vm67_vm4, %v57_v25, %v66_v33 }
 0x13a   :  { %v71_v36 = vsel %vm69_vm5, %v70_v34, %v68_v35 }
 0x13b   :  { %v73_v37 = vadd.f32 1e-06, %v71_v36 }
 0x13d   :  { %342 = vrcp.f32 %v73_v37 }
 0x143   :  { %v341_v38 = vpop.eup %340 }
 0x144   :  { %v76_v39 = vmul.f32 %v341_v38, %v46_v9 }
 0x146   :  { %v84_v42 = vmul.f32 %v285_v40, %v76_v39 }
 0x147   :  { %v343_v41 = vpop.eup %342 }
 0x148   :  { %v77_v43 = vmul.f32 %v343_v41, %v47_v13  ;;  %v92_v46 = vadd.f32 %v286_v44, %v84_v42 }
 0x14a   :  { %v85_v45 = vmul.f32 %v285_v40, %v77_v43 }
 0x14c   :  { %v93_v47 = vadd.f32 %v286_v44, %v85_v45 }
 0x14e   :  { %v94_v48 = vpack.c.bf16 %v93_v47, %v92_v46 }
 0x150   :  { %95 = vst.msk [vmem:[#allocation2] sm:$0xff] %vm36_vm0, %v94_v48 }
 0x157   :  { %v107_v49 = vld [vmem:[#allocation2] sm:$0xff] }
 0x158   :  { %310 = vmatmul.mubr.msk.bf16.vlgmr.msra.gmra.mrb[0].mxu0 %vm36_vm0, %v107_v49 }
 0x22b   :  { %v169_v53 = vpop.f32.mrb[0].mxu0 }
 0x22c   :  { %v170_v54 = vadd.f32 %v288_v52, %v169_v53  ;;  %v311_v55 = vpop.f32.mrb[1].mxu0 }
 0x22d   :  { %v172_v56 = vpop.f32.mrb[2].mxu0 }
 0x22e   :  { %v173_v57 = vadd.f32 %v288_v52, %v172_v56  ;;  %v312_v58 = vpop.f32.mrb[3].mxu0  ;;  %v176_v59 = vmax.f32 %v170_v54, 0.0 }
 0x230   :  { %v177_v60 = vmax.f32 %v173_v57, 0.0 }
 0x232   :  { %v180_v61 = vpack.c.bf16 %v177_v60, %v176_v59 }
 0x234   :  { %322 = vmatmul.mubr.msk.bf16.vlgmr.msra.gmra.mrb[0].mxu1 %vm213_vm6, %v180_v61 }
 0x307   :  { %v251_v63 = vpop.f32.mrb[0].mxu1 }
 0x308   :  { %v258_v1 = vadd.f32 %v251_v63, %v178_v62  ;;  %v323_v2 = vpop.f32.mrb[1].mxu1 }
 0x309   :  { %v254_v3 = vpop.f32.mrb[2].mxu1 }
 0x30a   :  { %260 = vst.msk [vmem:[#allocation3] sm:$0xff] %vm36_vm0, %v258_v1  ;;  %v259_v4 = vadd.f32 %v254_v3, %v179_v0  ;;  %v324_v5 = vpop.f32.mrb[3].mxu1 }
 0x30c   :  { %261 = vst.msk [vmem:[#allocation3 + $0x8] sm:$0xff] %vm36_vm0, %v259_v4 }
 0x311   :  { %v265_v6 = vld [vmem:[#allocation3] sm:$0xff] }
 0x312   :  { %267 = vst.msk [vmem:[#allocation4] sm:$0xff] %vm36_vm0, %v265_v6 }
 0x313   :  { %v266_v7 = vld [vmem:[#allocation3 + $0x8] sm:$0xff] }
 0x314   :  { %268 = vst.msk [vmem:[#allocation4 + $0x8] sm:$0xff] %vm36_vm0, %v266_v7 }
 0x315   :  { %355 = shalt.err (!%p352_p4)
}
 0x316   :  { %s356_s23 = scalar_lea.hbm %s480_s7, 256 }
 0x317   :  { %p357_p5 = scmp.ne.s32.totalorder %s480_s7, %s356_s23  ;;  %p360_p6 = scmp.lt.u32.totalorder %s356_s23, %s480_s7 }
 0x319   :  { %p362_p7 = pnand %p360_p6, %p357_p5 }
 0x31b   :  { %365 = shalt.err (!%p362_p7)
}
 0x31c   :  { %s371_s28 = smov 128   ;;  %s372_s29 = smov 8  }
 0x31d   :  { %280 = dma.vmem_to_hbm [thread:$0]  %s275_s5, 256, %s480_s7, [#allocation5], %s371_s28, %s371_s28, %s372_s29  }
 0x31e   :  { %366 = dma.done.wait [#allocation5], 256  }
 0x31f   :  { %367 = vsyncadd [#allocation5], 4294967040 }
 0x320   :  { %284 = vsyncpa [#allocation5], 1 }

// kernel: decoder_layer.10
= control target key start
LH: loop header
LB: loop body
LE: loop exit
PB: predicated region body
PF: predicated region fallthrough
CT: control target
= control target key end

     0   :  { %s1571_s0 = inlined_call_operand.vmem [shape: s32[2], index: 0, kind: input, shape index: {}]   ;;  %s1572_s1 = inlined_call_operand.vmem [shape: bf16[2,8,32], index: 1, kind: input, shape index: {}]   ;;  %s1573_s2 = inlined_call_operand.vmem [shape: bf16[2,16,32], index: 2, kind: input, shape index: {}]   ;;  %s1574_s3 = inlined_call_operand.vmem [shape: bf16[2,16,32], index: 3, kind: input, shape index: {}]   ;;  %s1575_s4 = inlined_call_operand.vmem [shape: bf16[32,32], index: 4, kind: input, shape index: {}]   ;;  %s1576_s5 = inlined_call_operand.vmem [shape: f32[1,32], index: 5, kind: input, shape index: {}]   ;;  %s1577_s6 = inlined_call_operand.vmem [shape: f32[2,8,32], index: 6, kind: input, shape index: {}]   ;;  %s1578_s7 = inlined_call_operand.vmem [shape: f32[2,8,32], index: 7, kind: output, shape index: {}]  }
   0x1   :  { %s12_s26 = sshll.u32 %s1571_s0, 4  ;;  %s13_s26 = int_to_ptr.vmem [resolvable:$true] %s12_s26 }
   0x2   :  { %s1324_s27 = scalar_lea.vmem %s13_s26, 16  ;;  %p1329_p1 = scmp.lt.s32.totalorder %s13_s26, %s13_s26 }
   0x3   :  { %p1325_p0 = scmp.ne.s32.totalorder %s13_s26, %s1324_s27  ;;  %p1330_p2 = scmp.lt.s32.totalorder %s1324_s27, %s1324_s27 }
   0x5   :  { %p1331_p3 = por %p1330_p2, %p1329_p1 }
   0x7   :  { %p1332_p4 = pnand %p1331_p3, %p1325_p0 }
   0x9   :  { %1335 = shalt.err (!%p1332_p4)  }
   0xa   :  { %s1362_s28 = smov [#allocation3]  }
   0xb   :  { %15 = dma.vmem_to_smem %s13_s26, 16, %s1362_s28, [#allocation2] }
   0xc   :  { %1348 = dma.done.wait [#allocation2], 16 }
   0xd   :  { %1349 = vsyncadd [#allocation2], 4294967280 }
   0xe   :  { %17 = sfence }
   0xf   :  { %s1411_s29 = smov 0   ;;  %s1413_s30 = smov 0  }
  0x10   :  { %s1415_s8 = smov 0  }
  0x11 LB: > { %s35_s0 = sadd.s32 1, %s1356_s30  ;;  %p1138_p5 = scmp.ge.s32.totalorder %s1360_s8, 1  ;;  %s1360_s8 = sphi %s1415_s8, %s23_s8   ;;  %s1356_s30 = sphi %s1413_s30, %s1582_s30   ;;  %s1352_s29 = sphi %s1411_s29, %s1581_s29  }
  0x12   : > { %p37_p6 = scmp.ge.s32.totalorder %s35_s0, 2  ;;  %p271_p7 = scmp.lt.s32.totalorder %s1360_s8, 3 }
  0x14   : > { %s1584_s0 = smov (%p37_p6, %s35_s0), 0  ;;  %p272_p8 = pnand %p1138_p5, %p271_p7 }
  0x15   : > { %p322_p9 = scmp.lt.s32.totalorder (!%p272_p8), %s1352_s29, 1  ;;  %v1363_v0 = vmov (!%p272_p8), 0.0   ;;  %vm1364_vm0 = vmmov (!%p272_p8), 0   ;;  %vm378_vm1 = vcmask (!%p272_p8), 64512   ;;  %s354_s18 = sld [smem:[#allocation3 + %s1352_s29]] (!%p272_p8)  ;;  %v355_v4 = vlaneseq (!%p272_p8) }
  0x16   : > { %275 = sbr.rel (%p272_p8) target bundleno = 2088 (0x828), region = 44  ;;  %1190 = vmatprep.subr.bf16.mxu0 (!%p272_p8), %v1363_v0  ;;  %1192 = vmatprep.mubr.msk.bf16.mxu0 (!%p272_p8), %vm1364_vm0, %v1363_v0  ;;  %vm427_vm3 = vcmask (!%p272_p8), 130048   ;;  %s1365_s19 = smov (!%p272_p8), 120   ;;  %v490_v32 = vld [vmem:[%s1575_s4] sm:$0xf] (!%p272_p8)  ;;  %vm494_vm4 = vcmask (!%p272_p8), 1043456  }
  0x17   : > { %1202 = vmatprep.subr.bf16.mxu1 (!%p272_p8), %v1363_v0  ;;  %1204 = vmatprep.mubr.msk.bf16.mxu1 (!%p272_p8), %vm1364_vm0, %v1363_v0  ;;  %v356_v5 = vand.u32 (!%p272_p8), 127, %v355_v4  ;;  %s1366_s20 = smov (!%p272_p8), 112   ;;  %v496_v33 = vsel (!%p272_p8), %vm494_vm4, %v490_v32, 0  ;;  %s1367_s26 = smov (!%p272_p8), 104   ;;  %vm1019_vm5 = vcmask (!%p272_p8), 261120  }
  0x18   : > { %1203 = vmatpush3.bf16.msra.mxu1 (!%p272_p8), %v496_v33 }
  0x19   : > { %1214 = vmatprep.subr.bf16.mxu1 (!%p272_p8), %v1363_v0 }
  0x1b   : > { %v357_v6 = vstv (!%p272_p8), %s354_s18 }
  0x1c   : > { %vm1452_vm2 = vcmp.lt.s32.totalorder (!%p272_p8), %v356_v5, %v357_v6 }
  0x1d   : > { %s323_s9 = scalar_select %p322_p9, %s1352_s29, 1 }
  0x1f   : > { %s1435_s10 = sshll.u32 %s323_s9, 3  ;;  %s1139_s14 = sshll.u32 %s323_s9, 2 }
  0x20   : > { %s333_s13 = scalar_lea.vmem %s1573_s2, %s1435_s10  ;;  %s328_s17 = scalar_lea.vmem %s1572_s1, %s1139_s14 }
  0x21   : > { %v1441_v1 = vld [vmem:[%s333_s13] sm:$0xff]   ;;  %s338_s23 = scalar_lea.vmem %s1574_s3, %s1435_s10  ;;  %s345_s15 = scalar_lea.vmem %s1577_s6, %s1435_s10 }
  0x22   : > { %v383_v2 = vsel %vm378_vm1, %v1441_v1, 0  ;;  %v359_v3 = vld [vmem:[%s328_s17] sm:$0xf]  ;;  %544 = vrot.lane.b32.xlu1 %v1441_v1, %s1365_s19 }
  0x23   : > { %1191 = vmatpush3.bf16.xpose.msra.mxu0 %v383_v2  ;;  %v1152_v15 = vcombine.low %v359_v3, %v359_v3  ;;  %v1468_v21 = vld [vmem:[%s338_s23] sm:$0xff]  }
  0x24   : > { %1196 = vmatprep.subr.bf16.mxu0 %v1363_v0 }
  0x26   : > { %542 = vrot.lane.b32.xlu1 %v1152_v15, %s1365_s19 }
  0x2a   : > { %1193 = vmatmul.mubr.msk.bf16.vlgmr.msra.gmra.mrb[0].mxu0 %vm378_vm1, %v359_v3  ;;  %701 = vrot.lane.b32.xlu1 %v1152_v15, %s1366_s20 }
  0x2b   : > { %1198 = vmatprep.mubr.msk.bf16.mxu0 %vm1364_vm0, %v1363_v0  ;;  %1197 = vmatpush3.bf16.msra.mxu0 %v1468_v21 }
  0x2c   : > { %1208 = vmatprep.subr.bf16.mxu0 %v1363_v0 }
  0x94   : > { %v545_v24 = vpop.permute.xlu1 %544 }
  0x95   : > { %v550_v26 = vsel %vm378_vm1, %v545_v24, 0 }
  0x98   : > { %v543_v29 = vpop.permute.xlu1 %542 }
  0x9c   : > { %v702_v31 = vpop.permute.xlu1 %701 }
  0xfd   : > { %v419_v7 = vpop.f32.mrb[0].mxu0 }
  0xfe   : > { %v425_v9 = vmul.f32 0.35355338, %v419_v7  ;;  %v1194_v10 = vpop.f32.mrb[1].mxu0 }
  0xff   : > { %v422_v11 = vpop.f32.mrb[2].mxu0 }
 0x100   : > { %v1195_v12 = vpop.f32.mrb[3].mxu0  ;;  %v426_v13 = vsel %vm1452_vm2, %v425_v9, -1e+09 }
 0x101   : > { %v428_v14 = vsel %vm427_vm3, %v426_v13, -inf }
 0x102   : > { %429 = vmax.xlane.f32.xlu0 %v428_v14  ;;  %v653_v14 = vld [vmem:[%s1575_s4 + $0x4] sm:$0xf] }
 0x18f   : > { %v430_v16 = vpop.xlane.xlu0 %429 }
 0x190   : > { %v431_v17 = vsub.f32 %v426_v13, %v430_v16 }
 0x192   : > { %v432_v18 = vmul.f32 1.442695, %v431_v17 }
 0x194   : > { %1308 = vpow2.f32 %v432_v18 }
 0x19e   : > { %v1309_v19 = vpop.eup %1308 }
 0x19f   : > { %v434_v20 = vsel %vm427_vm3, %v1309_v19, 0.0 }
 0x1a0   : > { %435 = vadd.xlane.f32.xlu0 %v434_v20 }
 0x1b6   : > { %703 = vrot.lane.b32.xlu0 %v1441_v1, %s1366_s20 }
 0x22d   : > { %v436_v22 = vpop.xlane.xlu0 %435 }
 0x22e   : > { %1310 = vrcp.f32 %v436_v22 }
 0x231   : > { %v704_v28 = vpop.permute.xlu0 %703 }
 0x232   : > { %v709_v30 = vsel %vm378_vm1, %v704_v28, 0  ;;  %v812_v28 = vld [vmem:[%s1575_s4 + $0x8] sm:$0xf] }
 0x233   : > { %v817_v32 = vsel %vm494_vm4, %v812_v28, 0 }
 0x238   : > { %v1311_v23 = vpop.eup %1310 }
 0x239   : > { %v438_v25 = vmul.f32 %v1311_v23, %v1309_v19 }
 0x23b   : > { %v439_v27 = vpack.c.bf16 %v438_v25, %v438_v25 }
 0x23d   : > { %1199 = vmatmul.mubr.msk.bf16.vlgmr.msra.gmra.mrb[4].mxu0 %vm427_vm3, %v439_v27 }
 0x23e   : > { %1209 = vmatpush3.bf16.xpose.msra.mxu0 %v550_v26  ;;  %1210 = vmatprep.mubr.msk.bf16.mxu0 %vm1364_vm0, %v1363_v0 }
 0x23f   : > { %1226 = vmatprep.subr.bf16.mxu0 %v1363_v0 }
 0x245   : > { %1211 = vmatmul.mubr.msk.bf16.vlgmr.msra.gmra.mrb[8].mxu0 %vm378_vm1, %v543_v29 }
 0x246   : > { %1227 = vmatpush3.bf16.xpose.msra.mxu0 %v709_v30  ;;  %1228 = vmatprep.mubr.msk.bf16.mxu0 %vm1364_vm0, %v1363_v0 }
 0x247   : > { %1232 = vmatprep.subr.bf16.mxu0 %v1363_v0 }
 0x24d   : > { %1229 = vmatmul.mubr.msk.bf16.vlgmr.msra.gmra.mrb[12].mxu0 %vm378_vm1, %v702_v31 }
 0x24e   : > { %1234 = vmatprep.mubr.msk.bf16.mxu0 %vm1364_vm0, %v1363_v0 }
 0x310   : > { %v483_v34 = vpop.f32.mrb[4].mxu0 }
 0x311   : > { %v489_v35 = vpack.c.bf16 %v483_v34, %v483_v34  ;;  %v1200_v36 = vpop.f32.mrb[5].mxu0 }
 0x312   : > { %v486_v37 = vpop.f32.mrb[6].mxu0 }
 0x313   : > { %v1201_v38 = vpop.f32.mrb[7].mxu0  ;;  %1205 = vmatmul.mubr.msk.bf16.vlgmr.msra.gmra.mrb[0].mxu1 %vm378_vm1, %v489_v35 }
 0x314   : > { %1216 = vmatprep.mubr.msk.bf16.mxu1 %vm1364_vm0, %v1363_v0 }
 0x318   : > { %v586_v39 = vpop.f32.mrb[8].mxu0 }
 0x319   : > { %v1212_v40 = vpop.f32.mrb[9].mxu0  ;;  %v592_v50 = vmul.f32 0.35355338, %v586_v39 }
 0x31a   : > { %v589_v41 = vpop.f32.mrb[10].mxu0 }
 0x31b   : > { %v1213_v42 = vpop.f32.mrb[11].mxu0  ;;  %v593_v51 = vsel %vm1452_vm2, %v592_v50, -1e+09 }
 0x31c   : > { %v594_v52 = vsel %vm427_vm3, %v593_v51, -inf }
 0x320   : > { %v745_v43 = vpop.f32.mrb[12].mxu0 }
 0x321   : > { %v751_v44 = vmul.f32 0.35355338, %v745_v43  ;;  %v1230_v45 = vpop.f32.mrb[13].mxu0  ;;  %v971_v43 = vld [vmem:[%s1575_s4 + $0xc] sm:$0xf] }
 0x322   : > { %v748_v46 = vpop.f32.mrb[14].mxu0 }
 0x323   : > { %v1231_v47 = vpop.f32.mrb[15].mxu0  ;;  %v752_v48 = vsel %vm1452_vm2, %v751_v44, -1e+09  ;;  %v976_v46 = vsel %vm494_vm4, %v971_v43, 0 }
 0x324   : > { %v753_v49 = vsel %vm427_vm3, %v752_v48, -inf }
 0x325   : > { %754 = vmax.xlane.f32.xlu1 %v753_v49 }
 0x336   : > { %765 = vrot.lane.b32.xlu1 %v1468_v21, %s1366_s20  ;;  %s352_s20 = scalar_lea.vmem %s1578_s7, %s1435_s10 }
 0x33a   : > { %860 = vrot.lane.b32.xlu1 %v1152_v15, %s1367_s26  ;;  %v658_v15 = vsel %vm494_vm4, %v653_v14, 0 }
 0x35e   : > { %595 = vmax.xlane.f32.xlu1 %v594_v52  ;;  %v1146_v52 = vld [vmem:[%s1576_s5] ss:$0 sm:$0xff] }
 0x36f   : > { %606 = vrot.lane.b32.xlu1 %v1468_v21, %s1365_s19 }
 0x3b2   : > { %v755_v53 = vpop.xlane.xlu1 %754 }
 0x3b3   : > { %v756_v54 = vsub.f32 %v752_v48, %v755_v53 }
 0x3b5   : > { %v757_v55 = vmul.f32 1.442695, %v756_v54 }
 0x3b6   : > { %v766_v56 = vpop.permute.xlu1 %765 }
 0x3b7   : > { %1312 = vpow2.f32 %v757_v55  ;;  %1233 = vmatpush3.bf16.msra.mxu0 %v766_v56 }
 0x3b8   : > { %1244 = vmatprep.subr.bf16.mxu0 %v1363_v0 }
 0x3ba   : > { %v861_v59 = vpop.permute.xlu1 %860 }
 0x3c1   : > { %v1313_v57 = vpop.eup %1312 }
 0x3c2   : > { %v759_v58 = vsel %vm427_vm3, %v1313_v57, 0.0 }
 0x3c3   : > { %760 = vadd.xlane.f32.xlu0 %v759_v58 }
 0x3d9   : > { %862 = vrot.lane.b32.xlu0 %v1441_v1, %s1367_s26 }
 0x3eb   : > { %v596_v60 = vpop.xlane.xlu1 %595 }
 0x3ec   : > { %v597_v61 = vsub.f32 %v593_v51, %v596_v60  ;;  %v364_v51 = vld [vmem:[%s345_s15] sm:$0xff] }
 0x3ed   : > { %v372_v53 = vadd.f32 %v1146_v52, %v364_v51 }
 0x3ee   : > { %v598_v62 = vmul.f32 1.442695, %v597_v61 }
 0x3ef   : > { %v607_v3 = vpop.permute.xlu1 %606 }
 0x3f0   : > { %1314 = vpow2.f32 %v598_v62  ;;  %1215 = vmatpush3.bf16.msra.mxu1 %v607_v3 }
 0x3f1   : > { %1220 = vmatprep.subr.bf16.mxu1 %v1363_v0 }
 0x3fa   : > { %v1315_v63 = vpop.eup %1314 }
 0x3fb   : > { %v600_v2 = vsel %vm427_vm3, %v1315_v63, 0.0 }
 0x3fc   : > { %601 = vadd.xlane.f32.xlu0 %v600_v2 }
 0x450   : > { %v761_v4 = vpop.xlane.xlu0 %760 }
 0x451   : > { %1316 = vrcp.f32 %v761_v4 }
 0x454   : > { %v863_v6 = vpop.permute.xlu0 %862 }
 0x455   : > { %v868_v1 = vsel %vm378_vm1, %v863_v6, 0 }
 0x45b   : > { %v1317_v5 = vpop.eup %1316 }
 0x45c   : > { %v763_v7 = vmul.f32 %v1317_v5, %v1313_v57 }
 0x45e   : > { %v764_v9 = vpack.c.bf16 %v763_v7, %v763_v7 }
 0x460   : > { %1235 = vmatmul.mubr.msk.bf16.vlgmr.msra.gmra.mrb[16].mxu0 %vm427_vm3, %v764_v9 }
 0x461   : > { %1245 = vmatpush3.bf16.xpose.msra.mxu0 %v868_v1  ;;  %1246 = vmatprep.mubr.msk.bf16.mxu0 %vm1364_vm0, %v1363_v0 }
 0x468   : > { %1247 = vmatmul.mubr.msk.bf16.vlgmr.msra.gmra.mrb[20].mxu0 %vm378_vm1, %v861_v59 }
 0x489   : > { %v602_v10 = vpop.xlane.xlu0 %601 }
 0x48a   : > { %1318 = vrcp.f32 %v602_v10 }
 0x494   : > { %v1319_v11 = vpop.eup %1318 }
 0x495   : > { %v604_v12 = vmul.f32 %v1319_v11, %v1315_v63 }
 0x497   : > { %v605_v13 = vpack.c.bf16 %v604_v12, %v604_v12 }
 0x499   : > { %1217 = vmatmul.mubr.msk.bf16.vlgmr.msra.gmra.mrb[4].mxu1 %vm427_vm3, %v605_v13 }
 0x49a   : > { %1222 = vmatprep.mubr.msk.bf16.mxu1 %vm1364_vm0, %v1363_v0  ;;  %1221 = vmatpush3.bf16.msra.mxu1 %v658_v15 }
 0x49b   : > { %1238 = vmatprep.subr.bf16.mxu1 %v1363_v0 }
 0x533   : > { %v805_v16 = vpop.f32.mrb[16].mxu0 }
 0x534   : > { %v1236_v17 = vpop.f32.mrb[17].mxu0  ;;  %v811_v8 = vpack.c.bf16 %v805_v16, %v805_v16 }
 0x535   : > { %v808_v18 = vpop.f32.mrb[18].mxu0 }
 0x536   : > { %v1237_v19 = vpop.f32.mrb[19].mxu0 }
 0x53b   : > { %v904_v20 = vpop.f32.mrb[20].mxu0 }
 0x53c   : > { %v910_v22 = vmul.f32 0.35355338, %v904_v20  ;;  %v1248_v23 = vpop.f32.mrb[21].mxu0 }
 0x53d   : > { %v907_v24 = vpop.f32.mrb[22].mxu0 }
 0x53e   : > { %v1249_v25 = vpop.f32.mrb[23].mxu0  ;;  %v911_v26 = vsel %vm1452_vm2, %v910_v22, -1e+09 }
 0x53f   : > { %v912_v27 = vsel %vm427_vm3, %v911_v26, -inf }
 0x540   : > { %913 = vmax.xlane.f32.xlu0 %v912_v27 }
 0x56c   : > { %v646_v29 = vpop.f32.mrb[4].mxu1 }
 0x56d   : > { %v652_v30 = vpack.c.bf16 %v646_v29, %v646_v29  ;;  %v1218_v31 = vpop.f32.mrb[5].mxu1 }
 0x56e   : > { %v649_v33 = vpop.f32.mrb[6].mxu1 }
 0x56f   : > { %v1219_v34 = vpop.f32.mrb[7].mxu1  ;;  %1223 = vmatmul.mubr.msk.bf16.vlgmr.msra.gmra.mrb[0].mxu1 %vm378_vm1, %v652_v30 }
 0x570   : > { %1239 = vmatpush3.bf16.msra.mxu1 %v817_v32  ;;  %1240 = vmatprep.mubr.msk.bf16.mxu1 %vm1364_vm0, %v1363_v0 }
 0x571   : > { %1250 = vmatprep.subr.bf16.mxu1 %v1363_v0 }
 0x57b   : > { %1241 = vmatmul.mubr.msk.bf16.vlgmr.msra.gmra.mrb[0].mxu1 %vm378_vm1, %v811_v8 }
 0x57c   : > { %1252 = vmatprep.mubr.msk.bf16.mxu1 %vm1364_vm0, %v1363_v0 }
 0x5cd   : > { %v914_v35 = vpop.xlane.xlu0 %913 }
 0x5ce   : > { %v915_v36 = vsub.f32 %v911_v26, %v914_v35 }
 0x5d0   : > { %v916_v37 = vmul.f32 1.442695, %v915_v36 }
 0x5d2   : > { %1320 = vpow2.f32 %v916_v37 }
 0x5dc   : > { %v1321_v38 = vpop.eup %1320 }
 0x5dd   : > { %v918_v39 = vsel %vm427_vm3, %v1321_v38, 0.0 }
 0x5de   : > { %919 = vadd.xlane.f32.xlu0 %v918_v39 }
 0x5f4   : > { %924 = vrot.lane.b32.xlu0 %v1468_v21, %s1367_s26 }
 0x66b   : > { %v920_v40 = vpop.xlane.xlu0 %919 }
 0x66c   : > { %1322 = vrcp.f32 %v920_v40 }
 0x66f   : > { %v925_v41 = vpop.permute.xlu0 %924 }
 0x670   : > { %1251 = vmatpush3.bf16.msra.mxu1 %v925_v41 }
 0x671   : > { %1256 = vmatprep.subr.bf16.mxu1 %v1363_v0 }
 0x676   : > { %v1323_v42 = vpop.eup %1322 }
 0x677   : > { %v922_v44 = vmul.f32 %v1323_v42, %v1321_v38 }
 0x679   : > { %v923_v45 = vpack.c.bf16 %v922_v44, %v922_v44 }
 0x67b   : > { %1253 = vmatmul.mubr.msk.bf16.vlgmr.msra.gmra.mrb[8].mxu1 %vm427_vm3, %v923_v45 }
 0x67c   : > { %1257 = vmatpush3.bf16.msra.mxu1 %v976_v46  ;;  %1258 = vmatprep.mubr.msk.bf16.mxu1 %vm1364_vm0, %v1363_v0 }
 0x74e   : > { %v964_v21 = vpop.f32.mrb[8].mxu1 }
 0x74f   : > { %v970_v47 = vpack.c.bf16 %v964_v21, %v964_v21  ;;  %v1254_v48 = vpop.f32.mrb[9].mxu1 }
 0x750   : > { %v967_v49 = vpop.f32.mrb[10].mxu1 }
 0x751   : > { %v1255_v50 = vpop.f32.mrb[11].mxu1  ;;  %1259 = vmatmul.mubr.msk.bf16.vlgmr.msra.gmra.mrb[0].mxu1 %vm378_vm1, %v970_v47 }
 0x824   : > { %v1012_v0 = vpop.f32.mrb[0].mxu1 }
 0x825   : > { %v1262_v54 = vadd.f32 %v1012_v0, %v372_v53  ;;  %v1260_v55 = vpop.f32.mrb[1].mxu1 }
 0x826   : > { %v1015_v56 = vpop.f32.mrb[2].mxu1 }
 0x827   : > { %1020 = vst.msk [vmem:[%s352_s20] sm:$0xff] %vm1019_vm5, %v1262_v54  ;;  %v1261_v57 = vpop.f32.mrb[3].mxu1 }
 0x828 PF: > { %s23_s8 = sadd.s32 1, %s1360_s8   ;;  %s1581_s29 = smov %s1356_s30 }
 0x829   : > { %p20_p10 = scmp.ge.s32.totalorder %s23_s8, 4   ;;  %s1582_s30 = smov %s1584_s0 }
 0x82b   :  { %22 = sbr.rel (!%p20_p10) target bundleno = 17 (0x11), region = 83 }

</bundles_post_ra>
